<compile_context>
chip_gen: v5e
topology: v5e:2x2
jax: 0.10.0
libtpu: 0.0.40
codegen_flags: <defaults>
</compile_context>

<pallas_src>
import numpy as np
import jax
import jax.numpy as jnp
from jax.experimental import pallas as pl
from jax.experimental.pallas import tpu as pltpu

SIGMA = 1.5
TRUNCATE = 4.0


# ----------------------------------------------------------------------------
# Host-side (glue): per-axis correlation matrices reproducing
# scipy.ndimage.gaussian_filter1d(order in {0, 2}, mode='reflect') exactly.
# ----------------------------------------------------------------------------
def _gaussian_kernel1d(sigma, order, radius):
    # Verbatim re-implementation of scipy.ndimage._filters._gaussian_kernel1d.
    sigma2 = sigma * sigma
    x = np.arange(-radius, radius + 1)
    phi_x = np.exp(-0.5 / sigma2 * x ** 2)
    phi_x = phi_x / phi_x.sum()
    if order == 0:
        return phi_x
    exponent_range = np.arange(order + 1)
    q = np.zeros(order + 1)
    q[0] = 1
    D = np.diag(exponent_range[1:], 1)
    P = np.diag(np.ones(order) / -sigma2, -1)
    Q_deriv = D + P
    for _ in range(order):
        q = Q_deriv.dot(q)
    q = (x[:, None] ** exponent_range).dot(q)
    return q * phi_x


def _reflect_index(m, n):
    # scipy 'reflect' boundary: (d c b a | a b c d | d c b a), period 2n.
    if n == 1:
        return 0
    m = int(np.mod(m, 2 * n))
    return 2 * n - 1 - m if m >= n else m


def _corr_matrix(weights, n):
    # M @ x  ==  scipy.ndimage.correlate1d(x, weights, mode='reflect') on an
    # axis of length n (boundary handling folded into the matrix).
    r = (len(weights) - 1) // 2
    M = np.zeros((n, n), dtype=np.float64)
    for i in range(n):
        for t in range(-r, r + 1):
            M[i, _reflect_index(i + t, n)] += weights[t + r]
    return M


def _log_matrices(H, W, C, sigma=SIGMA, truncate=TRUNCATE):
    radius = int(truncate * sigma + 0.5)
    g0 = _gaussian_kernel1d(sigma, 0, radius)[::-1]   # order-0 (smoothing)
    g2 = _gaussian_kernel1d(sigma, 2, radius)[::-1]   # order-2 (2nd derivative)
    return (_corr_matrix(g0, H), _corr_matrix(g2, H),
            _corr_matrix(g0, W), _corr_matrix(g2, W),
            _corr_matrix(g0, C), _corr_matrix(g2, C))


# ----------------------------------------------------------------------------
# Pallas kernel: LoG of both images, sign compare, disagreement count / N.
# ----------------------------------------------------------------------------
def _balanced_sum(terms):
    terms = list(terms)
    while len(terms) > 1:
        nxt = [terms[i] + terms[i + 1] for i in range(0, len(terms) - 1, 2)]
        if len(terms) % 2:
            nxt.append(terms[-1])
        terms = nxt
    return terms[0]


def _lap_loss_kernel(sr_ref, hr_ref, gh_ref, gw0t_ref, gw2t_ref,
                     gc0_ref, gc2_ref, o_ref, s_ref, t_ref):
    H = gh_ref.shape[1]          # gh is (2H, H): [gh0; gh2]
    W = gw0t_ref.shape[0]
    C = gc0_ref.shape[0]

    gh = gh_ref[...]             # (2H, H)
    gw0t = gw0t_ref[...]         # (W, W) = gw0^T
    gw2t = gw2t_ref[...]         # (W, W) = gw2^T

    def log_image(x):            # x: (H, C*W)  ->  LoG with rows (c, h), cols w
        # H-axis: one big matmul producing both filter orders for all channels.
        ab = jnp.dot(gh, x, preferred_element_type=jnp.float32)   # (2H, C*W)
        # Hoisted per-channel column blocks (a = order-0 in H, b = order-2 in H).
        a_blk = [ab[0:H, k * W:(k + 1) * W] for k in range(C)]
        b_blk = [ab[H:2 * H, k * W:(k + 1) * W] for k in range(C)]
        # Channel mix (C x C), scalars from SMEM, balanced add trees; pack the
        # mixed planes into (C*H, W) scratch so the W-axis is 2 big matmuls.
        for c in range(C):
            s_terms = ([gc0_ref[c, k] * b_blk[k] for k in range(C)]
                       + [gc2_ref[c, k] * a_blk[k] for k in range(C)])
            t_terms = [gc0_ref[c, k] * a_blk[k] for k in range(C)]
            s_ref[c * H:(c + 1) * H, :] = _balanced_sum(s_terms)   # needs gw0
            t_ref[c * H:(c + 1) * H, :] = _balanced_sum(t_terms)   # needs gw2
        # W-axis: two (C*H, W) @ (W, W) matmuls.
        return (jnp.dot(s_ref[...], gw0t, preferred_element_type=jnp.float32)
                + jnp.dot(t_ref[...], gw2t, preferred_element_type=jnp.float32))

    lap_sr = log_image(sr_ref[...])
    lap_hr = log_image(hr_ref[...])
    # Fused edge comparison: count sign disagreements directly (0/1 L1).
    diff = jnp.where((lap_sr < 0.0) != (lap_hr < 0.0), 1.0, 0.0)
    o_ref[0] = jnp.sum(diff.astype(jnp.float32)) / jnp.float32(C * H * W)


def lap_loss(sr, hr):
    """sr, hr: NCHW float arrays (PyTorch convention). Returns scalar L1 loss."""
    _, C, H, W = sr.shape
    gh0, gh2, gw0, gw2, gc0, gc2 = _log_matrices(H, W, C)
    f32 = jnp.float32

    def to_h_major(x):           # (C, H, W) -> (H, C*W): rows = h, lanes = (c, w)
        return jnp.transpose(x.astype(f32), (1, 0, 2)).reshape(H, C * W)

    gh = np.concatenate([gh0, gh2], axis=0)               # (2H, H), orders stacked
    args = (to_h_major(sr[0]), to_h_major(hr[0]),
            jnp.asarray(gh, f32),
            jnp.asarray(np.ascontiguousarray(gw0.T), f32),
            jnp.asarray(np.ascontiguousarray(gw2.T), f32),
            jnp.asarray(gc0, f32), jnp.asarray(gc2, f32))
    vmem = pltpu.MemorySpace.VMEM
    smem = pltpu.MemorySpace.SMEM
    out = pl.pallas_call(
        _lap_loss_kernel,
        out_shape=jax.ShapeDtypeStruct((1,), jnp.float32),
        in_specs=[pl.BlockSpec(memory_space=vmem)] * 5
                 + [pl.BlockSpec(memory_space=smem)] * 2,
        out_specs=pl.BlockSpec(memory_space=smem),
        scratch_shapes=[pltpu.VMEM((C * H, W), jnp.float32),
                        pltpu.VMEM((C * H, W), jnp.float32)],
    )(*args)
    return out[0]


# ----------------------------------------------------------------------------
# Pure-numpy reference (same precomputed matrices) for a host-side sanity check.
# ----------------------------------------------------------------------------
def _lap_reference_np(sr, hr, mats):
    gh0, gh2, gw0, gw2, gc0, gc2 = [np.asarray(m, np.float64) for m in mats]
    ah = lambda m, v: np.einsum('hk,ckw->chw', m, v)
    aw = lambda m, v: np.einsum('wk,chk->chw', m, v)
    ac = lambda m, v: np.einsum('cd,dhw->chw', m, v)

    def log3(x):
        return (ac(gc0, aw(gw0, ah(gh2, x)))
                + ac(gc0, aw(gw2, ah(gh0, x)))
                + ac(gc2, aw(gw0, ah(gh0, x))))

    e_sr = (log3(np.asarray(sr[0], np.float64)) < 0).astype(np.float64)
    e_hr = (log3(np.asarray(hr[0], np.float64)) < 0).astype(np.float64)
    return float(np.mean(np.abs(e_sr - e_hr)))


if __name__ == "__main__":
    # TODO(synk): the reference module's .cpu()/.numpy() round-trips and the
    # unused pix_range() helper are host-side artifacts with no device kernel
    # equivalent; only the math that affects the returned loss is implemented.
    B, C, H, W = 2, 3, 16, 16
    key = jax.random.PRNGKey(0)
    k1, k2 = jax.random.split(key)
    sr = jax.random.uniform(k1, (B, C, H, W), dtype=jnp.float32)
    hr = jax.random.uniform(k2, (B, C, H, W), dtype=jnp.float32)

    loss = jax.block_until_ready(lap_loss(sr, hr))

    # Lenient check: the (<0) threshold at LoG zero-crossings may legitimately
    # flip a few pixels between f32 MXU math and f64 numpy math.
    ref = _lap_reference_np(np.asarray(sr), np.asarray(hr), _log_matrices(H, W, C))
    assert abs(float(loss) - ref) <= 6.0 / (C * H * W) + 1e-6, (float(loss), ref)

    print("KERNEL_OK")
</pallas_src>

<mosaic_0001>
module attributes {stable_mosaic.version = 11 : i64} {
  func.func @_lap_loss_kernel(%arg0: memref<16x48xf32, #tpu.memory_space<vmem>>, %arg1: memref<16x48xf32, #tpu.memory_space<vmem>>, %arg2: memref<32x16xf32, #tpu.memory_space<vmem>>, %arg3: memref<16x16xf32, #tpu.memory_space<vmem>>, %arg4: memref<16x16xf32, #tpu.memory_space<vmem>>, %arg5: memref<3x3xf32, #tpu.memory_space<smem>>, %arg6: memref<3x3xf32, #tpu.memory_space<smem>>, %arg7: memref<1xf32, #tpu.memory_space<smem>>, %arg8: memref<48x16xf32, #tpu.memory_space<vmem>>, %arg9: memref<48x16xf32, #tpu.memory_space<vmem>>) attributes {dimension_semantics = [], scalar_prefetch = 0 : i64, scratch_operands = 2 : i64, tpu.core_type = #tpu.core_type<tc>} {
    %c0 = arith.constant 0 : index
    %c0_0 = arith.constant 0 : index
    %0 = vector.load %arg2[%c0, %c0_0] : memref<32x16xf32, #tpu.memory_space<vmem>>, vector<32x16xf32>
    %c0_1 = arith.constant 0 : index
    %c0_2 = arith.constant 0 : index
    %1 = vector.load %arg3[%c0_1, %c0_2] : memref<16x16xf32, #tpu.memory_space<vmem>>, vector<16x16xf32>
    %c0_3 = arith.constant 0 : index
    %c0_4 = arith.constant 0 : index
    %2 = vector.load %arg4[%c0_3, %c0_4] : memref<16x16xf32, #tpu.memory_space<vmem>>, vector<16x16xf32>
    %c0_5 = arith.constant 0 : index
    %c0_6 = arith.constant 0 : index
    %3 = vector.load %arg0[%c0_5, %c0_6] : memref<16x48xf32, #tpu.memory_space<vmem>>, vector<16x48xf32>
    %cst = arith.constant dense<0.000000e+00> : vector<32x48xf32>
    %4 = tpu.matmul %0, %3, %cst {dimension_numbers = #tpu.dot_dimension_numbers<[1], [0], [0], [1], [0, 0, 1, 1], [], []>} : vector<32x16xf32>, vector<16x48xf32>, vector<32x48xf32> -> vector<32x48xf32>
    %5 = vector.extract_strided_slice %4 {offsets = [0, 0], sizes = [16, 16], strides = [1, 1]} : vector<32x48xf32> to vector<16x16xf32>
    %6 = vector.extract_strided_slice %4 {offsets = [0, 16], sizes = [16, 16], strides = [1, 1]} : vector<32x48xf32> to vector<16x16xf32>
    %7 = vector.extract_strided_slice %4 {offsets = [0, 32], sizes = [16, 16], strides = [1, 1]} : vector<32x48xf32> to vector<16x16xf32>
    %8 = vector.extract_strided_slice %4 {offsets = [16, 0], sizes = [16, 16], strides = [1, 1]} : vector<32x48xf32> to vector<16x16xf32>
    %9 = vector.extract_strided_slice %4 {offsets = [16, 16], sizes = [16, 16], strides = [1, 1]} : vector<32x48xf32> to vector<16x16xf32>
    %10 = vector.extract_strided_slice %4 {offsets = [16, 32], sizes = [16, 16], strides = [1, 1]} : vector<32x48xf32> to vector<16x16xf32>
    %c0_7 = arith.constant 0 : index
    %c0_8 = arith.constant 0 : index
    %11 = memref.load %arg5[%c0_7, %c0_8] : memref<3x3xf32, #tpu.memory_space<smem>>
    %12 = vector.broadcast %11 : f32 to vector<16x16xf32>
    %13 = arith.mulf %12, %8 : vector<16x16xf32>
    %c0_9 = arith.constant 0 : index
    %c1 = arith.constant 1 : index
    %14 = memref.load %arg5[%c0_9, %c1] : memref<3x3xf32, #tpu.memory_space<smem>>
    %15 = vector.broadcast %14 : f32 to vector<16x16xf32>
    %16 = arith.mulf %15, %9 : vector<16x16xf32>
    %c0_10 = arith.constant 0 : index
    %c2 = arith.constant 2 : index
    %17 = memref.load %arg5[%c0_10, %c2] : memref<3x3xf32, #tpu.memory_space<smem>>
    %18 = vector.broadcast %17 : f32 to vector<16x16xf32>
    %19 = arith.mulf %18, %10 : vector<16x16xf32>
    %c0_11 = arith.constant 0 : index
    %c0_12 = arith.constant 0 : index
    %20 = memref.load %arg6[%c0_11, %c0_12] : memref<3x3xf32, #tpu.memory_space<smem>>
    %21 = vector.broadcast %20 : f32 to vector<16x16xf32>
    %22 = arith.mulf %21, %5 : vector<16x16xf32>
    %c0_13 = arith.constant 0 : index
    %c1_14 = arith.constant 1 : index
    %23 = memref.load %arg6[%c0_13, %c1_14] : memref<3x3xf32, #tpu.memory_space<smem>>
    %24 = vector.broadcast %23 : f32 to vector<16x16xf32>
    %25 = arith.mulf %24, %6 : vector<16x16xf32>
    %c0_15 = arith.constant 0 : index
    %c2_16 = arith.constant 2 : index
    %26 = memref.load %arg6[%c0_15, %c2_16] : memref<3x3xf32, #tpu.memory_space<smem>>
    %27 = vector.broadcast %26 : f32 to vector<16x16xf32>
    %28 = arith.mulf %27, %7 : vector<16x16xf32>
    %c0_17 = arith.constant 0 : index
    %c0_18 = arith.constant 0 : index
    %29 = memref.load %arg5[%c0_17, %c0_18] : memref<3x3xf32, #tpu.memory_space<smem>>
    %30 = vector.broadcast %29 : f32 to vector<16x16xf32>
    %31 = arith.mulf %30, %5 : vector<16x16xf32>
    %c0_19 = arith.constant 0 : index
    %c1_20 = arith.constant 1 : index
    %32 = memref.load %arg5[%c0_19, %c1_20] : memref<3x3xf32, #tpu.memory_space<smem>>
    %33 = vector.broadcast %32 : f32 to vector<16x16xf32>
    %34 = arith.mulf %33, %6 : vector<16x16xf32>
    %c0_21 = arith.constant 0 : index
    %c2_22 = arith.constant 2 : index
    %35 = memref.load %arg5[%c0_21, %c2_22] : memref<3x3xf32, #tpu.memory_space<smem>>
    %36 = vector.broadcast %35 : f32 to vector<16x16xf32>
    %37 = arith.mulf %36, %7 : vector<16x16xf32>
    %38 = arith.addf %13, %16 : vector<16x16xf32>
    %39 = arith.addf %19, %22 : vector<16x16xf32>
    %40 = arith.addf %25, %28 : vector<16x16xf32>
    %41 = arith.addf %38, %39 : vector<16x16xf32>
    %42 = arith.addf %41, %40 : vector<16x16xf32>
    %c0_23 = arith.constant 0 : index
    %c0_24 = arith.constant 0 : index
    %43 = vector.load %arg8[%c0_23, %c0_24] : memref<48x16xf32, #tpu.memory_space<vmem>>, vector<16x16xf32>
    tpu.vector_store %arg8[%c0_23, %c0_24], %42 {strides = array<i32>} : memref<48x16xf32, #tpu.memory_space<vmem>>, vector<16x16xf32>,
    %44 = arith.addf %31, %34 : vector<16x16xf32>
    %45 = arith.addf %44, %37 : vector<16x16xf32>
    %c0_25 = arith.constant 0 : index
    %c0_26 = arith.constant 0 : index
    %46 = vector.load %arg9[%c0_25, %c0_26] : memref<48x16xf32, #tpu.memory_space<vmem>>, vector<16x16xf32>
    tpu.vector_store %arg9[%c0_25, %c0_26], %45 {strides = array<i32>} : memref<48x16xf32, #tpu.memory_space<vmem>>, vector<16x16xf32>,
    %c1_27 = arith.constant 1 : index
    %c0_28 = arith.constant 0 : index
    %47 = memref.load %arg5[%c1_27, %c0_28] : memref<3x3xf32, #tpu.memory_space<smem>>
    %48 = vector.broadcast %47 : f32 to vector<16x16xf32>
    %49 = arith.mulf %48, %8 : vector<16x16xf32>
    %c1_29 = arith.constant 1 : index
    %c1_30 = arith.constant 1 : index
    %50 = memref.load %arg5[%c1_29, %c1_30] : memref<3x3xf32, #tpu.memory_space<smem>>
    %51 = vector.broadcast %50 : f32 to vector<16x16xf32>
    %52 = arith.mulf %51, %9 : vector<16x16xf32>
    %c1_31 = arith.constant 1 : index
    %c2_32 = arith.constant 2 : index
    %53 = memref.load %arg5[%c1_31, %c2_32] : memref<3x3xf32, #tpu.memory_space<smem>>
    %54 = vector.broadcast %53 : f32 to vector<16x16xf32>
    %55 = arith.mulf %54, %10 : vector<16x16xf32>
    %c1_33 = arith.constant 1 : index
    %c0_34 = arith.constant 0 : index
    %56 = memref.load %arg6[%c1_33, %c0_34] : memref<3x3xf32, #tpu.memory_space<smem>>
    %57 = vector.broadcast %56 : f32 to vector<16x16xf32>
    %58 = arith.mulf %57, %5 : vector<16x16xf32>
    %c1_35 = arith.constant 1 : index
    %c1_36 = arith.constant 1 : index
    %59 = memref.load %arg6[%c1_35, %c1_36] : memref<3x3xf32, #tpu.memory_space<smem>>
    %60 = vector.broadcast %59 : f32 to vector<16x16xf32>
    %61 = arith.mulf %60, %6 : vector<16x16xf32>
    %c1_37 = arith.constant 1 : index
    %c2_38 = arith.constant 2 : index
    %62 = memref.load %arg6[%c1_37, %c2_38] : memref<3x3xf32, #tpu.memory_space<smem>>
    %63 = vector.broadcast %62 : f32 to vector<16x16xf32>
    %64 = arith.mulf %63, %7 : vector<16x16xf32>
    %c1_39 = arith.constant 1 : index
    %c0_40 = arith.constant 0 : index
    %65 = memref.load %arg5[%c1_39, %c0_40] : memref<3x3xf32, #tpu.memory_space<smem>>
    %66 = vector.broadcast %65 : f32 to vector<16x16xf32>
    %67 = arith.mulf %66, %5 : vector<16x16xf32>
    %c1_41 = arith.constant 1 : index
    %c1_42 = arith.constant 1 : index
    %68 = memref.load %arg5[%c1_41, %c1_42] : memref<3x3xf32, #tpu.memory_space<smem>>
    %69 = vector.broadcast %68 : f32 to vector<16x16xf32>
    %70 = arith.mulf %69, %6 : vector<16x16xf32>
    %c1_43 = arith.constant 1 : index
    %c2_44 = arith.constant 2 : index
    %71 = memref.load %arg5[%c1_43, %c2_44] : memref<3x3xf32, #tpu.memory_space<smem>>
    %72 = vector.broadcast %71 : f32 to vector<16x16xf32>
    %73 = arith.mulf %72, %7 : vector<16x16xf32>
    %74 = arith.addf %49, %52 : vector<16x16xf32>
    %75 = arith.addf %55, %58 : vector<16x16xf32>
    %76 = arith.addf %61, %64 : vector<16x16xf32>
    %77 = arith.addf %74, %75 : vector<16x16xf32>
    %78 = arith.addf %77, %76 : vector<16x16xf32>
    %c16 = arith.constant 16 : index
    %c0_45 = arith.constant 0 : index
    %79 = vector.load %arg8[%c16, %c0_45] : memref<48x16xf32, #tpu.memory_space<vmem>>, vector<16x16xf32>
    tpu.vector_store %arg8[%c16, %c0_45], %78 {strides = array<i32>} : memref<48x16xf32, #tpu.memory_space<vmem>>, vector<16x16xf32>,
    %80 = arith.addf %67, %70 : vector<16x16xf32>
    %81 = arith.addf %80, %73 : vector<16x16xf32>
    %c16_46 = arith.constant 16 : index
    %c0_47 = arith.constant 0 : index
    %82 = vector.load %arg9[%c16_46, %c0_47] : memref<48x16xf32, #tpu.memory_space<vmem>>, vector<16x16xf32>
    tpu.vector_store %arg9[%c16_46, %c0_47], %81 {strides = array<i32>} : memref<48x16xf32, #tpu.memory_space<vmem>>, vector<16x16xf32>,
    %c2_48 = arith.constant 2 : index
    %c0_49 = arith.constant 0 : index
    %83 = memref.load %arg5[%c2_48, %c0_49] : memref<3x3xf32, #tpu.memory_space<smem>>
    %84 = vector.broadcast %83 : f32 to vector<16x16xf32>
    %85 = arith.mulf %84, %8 : vector<16x16xf32>
    %c2_50 = arith.constant 2 : index
    %c1_51 = arith.constant 1 : index
    %86 = memref.load %arg5[%c2_50, %c1_51] : memref<3x3xf32, #tpu.memory_space<smem>>
    %87 = vector.broadcast %86 : f32 to vector<16x16xf32>
    %88 = arith.mulf %87, %9 : vector<16x16xf32>
    %c2_52 = arith.constant 2 : index
    %c2_53 = arith.constant 2 : index
    %89 = memref.load %arg5[%c2_52, %c2_53] : memref<3x3xf32, #tpu.memory_space<smem>>
    %90 = vector.broadcast %89 : f32 to vector<16x16xf32>
    %91 = arith.mulf %90, %10 : vector<16x16xf32>
    %c2_54 = arith.constant 2 : index
    %c0_55 = arith.constant 0 : index
    %92 = memref.load %arg6[%c2_54, %c0_55] : memref<3x3xf32, #tpu.memory_space<smem>>
    %93 = vector.broadcast %92 : f32 to vector<16x16xf32>
    %94 = arith.mulf %93, %5 : vector<16x16xf32>
    %c2_56 = arith.constant 2 : index
    %c1_57 = arith.constant 1 : index
    %95 = memref.load %arg6[%c2_56, %c1_57] : memref<3x3xf32, #tpu.memory_space<smem>>
    %96 = vector.broadcast %95 : f32 to vector<16x16xf32>
    %97 = arith.mulf %96, %6 : vector<16x16xf32>
    %c2_58 = arith.constant 2 : index
    %c2_59 = arith.constant 2 : index
    %98 = memref.load %arg6[%c2_58, %c2_59] : memref<3x3xf32, #tpu.memory_space<smem>>
    %99 = vector.broadcast %98 : f32 to vector<16x16xf32>
    %100 = arith.mulf %99, %7 : vector<16x16xf32>
    %c2_60 = arith.constant 2 : index
    %c0_61 = arith.constant 0 : index
    %101 = memref.load %arg5[%c2_60, %c0_61] : memref<3x3xf32, #tpu.memory_space<smem>>
    %102 = vector.broadcast %101 : f32 to vector<16x16xf32>
    %103 = arith.mulf %102, %5 : vector<16x16xf32>
    %c2_62 = arith.constant 2 : index
    %c1_63 = arith.constant 1 : index
    %104 = memref.load %arg5[%c2_62, %c1_63] : memref<3x3xf32, #tpu.memory_space<smem>>
    %105 = vector.broadcast %104 : f32 to vector<16x16xf32>
    %106 = arith.mulf %105, %6 : vector<16x16xf32>
    %c2_64 = arith.constant 2 : index
    %c2_65 = arith.constant 2 : index
    %107 = memref.load %arg5[%c2_64, %c2_65] : memref<3x3xf32, #tpu.memory_space<smem>>
    %108 = vector.broadcast %107 : f32 to vector<16x16xf32>
    %109 = arith.mulf %108, %7 : vector<16x16xf32>
    %110 = arith.addf %85, %88 : vector<16x16xf32>
    %111 = arith.addf %91, %94 : vector<16x16xf32>
    %112 = arith.addf %97, %100 : vector<16x16xf32>
    %113 = arith.addf %110, %111 : vector<16x16xf32>
    %114 = arith.addf %113, %112 : vector<16x16xf32>
    %c32 = arith.constant 32 : index
    %c0_66 = arith.constant 0 : index
    %115 = vector.load %arg8[%c32, %c0_66] : memref<48x16xf32, #tpu.memory_space<vmem>>, vector<16x16xf32>
    tpu.vector_store %arg8[%c32, %c0_66], %114 {strides = array<i32>} : memref<48x16xf32, #tpu.memory_space<vmem>>, vector<16x16xf32>,
    %116 = arith.addf %103, %106 : vector<16x16xf32>
    %117 = arith.addf %116, %109 : vector<16x16xf32>
    %c32_67 = arith.constant 32 : index
    %c0_68 = arith.constant 0 : index
    %118 = vector.load %arg9[%c32_67, %c0_68] : memref<48x16xf32, #tpu.memory_space<vmem>>, vector<16x16xf32>
    tpu.vector_store %arg9[%c32_67, %c0_68], %117 {strides = array<i32>} : memref<48x16xf32, #tpu.memory_space<vmem>>, vector<16x16xf32>,
    %c0_69 = arith.constant 0 : index
    %c0_70 = arith.constant 0 : index
    %119 = vector.load %arg8[%c0_69, %c0_70] : memref<48x16xf32, #tpu.memory_space<vmem>>, vector<48x16xf32>
    %cst_71 = arith.constant dense<0.000000e+00> : vector<48x16xf32>
    %120 = tpu.matmul %119, %1, %cst_71 {dimension_numbers = #tpu.dot_dimension_numbers<[1], [0], [0], [1], [0, 0, 1, 1], [], []>} : vector<48x16xf32>, vector<16x16xf32>, vector<48x16xf32> -> vector<48x16xf32>
    %c0_72 = arith.constant 0 : index
    %c0_73 = arith.constant 0 : index
    %121 = vector.load %arg9[%c0_72, %c0_73] : memref<48x16xf32, #tpu.memory_space<vmem>>, vector<48x16xf32>
    %cst_74 = arith.constant dense<0.000000e+00> : vector<48x16xf32>
    %122 = tpu.matmul %121, %2, %cst_74 {dimension_numbers = #tpu.dot_dimension_numbers<[1], [0], [0], [1], [0, 0, 1, 1], [], []>} : vector<48x16xf32>, vector<16x16xf32>, vector<48x16xf32> -> vector<48x16xf32>
    %123 = arith.addf %120, %122 : vector<48x16xf32>
    %c0_75 = arith.constant 0 : index
    %c0_76 = arith.constant 0 : index
    %124 = vector.load %arg1[%c0_75, %c0_76] : memref<16x48xf32, #tpu.memory_space<vmem>>, vector<16x48xf32>
    %cst_77 = arith.constant dense<0.000000e+00> : vector<32x48xf32>
    %125 = tpu.matmul %0, %124, %cst_77 {dimension_numbers = #tpu.dot_dimension_numbers<[1], [0], [0], [1], [0, 0, 1, 1], [], []>} : vector<32x16xf32>, vector<16x48xf32>, vector<32x48xf32> -> vector<32x48xf32>
    %126 = vector.extract_strided_slice %125 {offsets = [0, 0], sizes = [16, 16], strides = [1, 1]} : vector<32x48xf32> to vector<16x16xf32>
    %127 = vector.extract_strided_slice %125 {offsets = [0, 16], sizes = [16, 16], strides = [1, 1]} : vector<32x48xf32> to vector<16x16xf32>
    %128 = vector.extract_strided_slice %125 {offsets = [0, 32], sizes = [16, 16], strides = [1, 1]} : vector<32x48xf32> to vector<16x16xf32>
    %129 = vector.extract_strided_slice %125 {offsets = [16, 0], sizes = [16, 16], strides = [1, 1]} : vector<32x48xf32> to vector<16x16xf32>
    %130 = vector.extract_strided_slice %125 {offsets = [16, 16], sizes = [16, 16], strides = [1, 1]} : vector<32x48xf32> to vector<16x16xf32>
    %131 = vector.extract_strided_slice %125 {offsets = [16, 32], sizes = [16, 16], strides = [1, 1]} : vector<32x48xf32> to vector<16x16xf32>
    %c0_78 = arith.constant 0 : index
    %c0_79 = arith.constant 0 : index
    %132 = memref.load %arg5[%c0_78, %c0_79] : memref<3x3xf32, #tpu.memory_space<smem>>
    %133 = vector.broadcast %132 : f32 to vector<16x16xf32>
    %134 = arith.mulf %133, %129 : vector<16x16xf32>
    %c0_80 = arith.constant 0 : index
    %c1_81 = arith.constant 1 : index
    %135 = memref.load %arg5[%c0_80, %c1_81] : memref<3x3xf32, #tpu.memory_space<smem>>
    %136 = vector.broadcast %135 : f32 to vector<16x16xf32>
    %137 = arith.mulf %136, %130 : vector<16x16xf32>
    %c0_82 = arith.constant 0 : index
    %c2_83 = arith.constant 2 : index
    %138 = memref.load %arg5[%c0_82, %c2_83] : memref<3x3xf32, #tpu.memory_space<smem>>
    %139 = vector.broadcast %138 : f32 to vector<16x16xf32>
    %140 = arith.mulf %139, %131 : vector<16x16xf32>
    %c0_84 = arith.constant 0 : index
    %c0_85 = arith.constant 0 : index
    %141 = memref.load %arg6[%c0_84, %c0_85] : memref<3x3xf32, #tpu.memory_space<smem>>
    %142 = vector.broadcast %141 : f32 to vector<16x16xf32>
    %143 = arith.mulf %142, %126 : vector<16x16xf32>
    %c0_86 = arith.constant 0 : index
    %c1_87 = arith.constant 1 : index
    %144 = memref.load %arg6[%c0_86, %c1_87] : memref<3x3xf32, #tpu.memory_space<smem>>
    %145 = vector.broadcast %144 : f32 to vector<16x16xf32>
    %146 = arith.mulf %145, %127 : vector<16x16xf32>
    %c0_88 = arith.constant 0 : index
    %c2_89 = arith.constant 2 : index
    %147 = memref.load %arg6[%c0_88, %c2_89] : memref<3x3xf32, #tpu.memory_space<smem>>
    %148 = vector.broadcast %147 : f32 to vector<16x16xf32>
    %149 = arith.mulf %148, %128 : vector<16x16xf32>
    %c0_90 = arith.constant 0 : index
    %c0_91 = arith.constant 0 : index
    %150 = memref.load %arg5[%c0_90, %c0_91] : memref<3x3xf32, #tpu.memory_space<smem>>
    %151 = vector.broadcast %150 : f32 to vector<16x16xf32>
    %152 = arith.mulf %151, %126 : vector<16x16xf32>
    %c0_92 = arith.constant 0 : index
    %c1_93 = arith.constant 1 : index
    %153 = memref.load %arg5[%c0_92, %c1_93] : memref<3x3xf32, #tpu.memory_space<smem>>
    %154 = vector.broadcast %153 : f32 to vector<16x16xf32>
    %155 = arith.mulf %154, %127 : vector<16x16xf32>
    %c0_94 = arith.constant 0 : index
    %c2_95 = arith.constant 2 : index
    %156 = memref.load %arg5[%c0_94, %c2_95] : memref<3x3xf32, #tpu.memory_space<smem>>
    %157 = vector.broadcast %156 : f32 to vector<16x16xf32>
    %158 = arith.mulf %157, %128 : vector<16x16xf32>
    %159 = arith.addf %134, %137 : vector<16x16xf32>
    %160 = arith.addf %140, %143 : vector<16x16xf32>
    %161 = arith.addf %146, %149 : vector<16x16xf32>
    %162 = arith.addf %159, %160 : vector<16x16xf32>
    %163 = arith.addf %162, %161 : vector<16x16xf32>
    %c0_96 = arith.constant 0 : index
    %c0_97 = arith.constant 0 : index
    %164 = vector.load %arg8[%c0_96, %c0_97] : memref<48x16xf32, #tpu.memory_space<vmem>>, vector<16x16xf32>
    tpu.vector_store %arg8[%c0_96, %c0_97], %163 {strides = array<i32>} : memref<48x16xf32, #tpu.memory_space<vmem>>, vector<16x16xf32>,
    %165 = arith.addf %152, %155 : vector<16x16xf32>
    %166 = arith.addf %165, %158 : vector<16x16xf32>
    %c0_98 = arith.constant 0 : index
    %c0_99 = arith.constant 0 : index
    %167 = vector.load %arg9[%c0_98, %c0_99] : memref<48x16xf32, #tpu.memory_space<vmem>>, vector<16x16xf32>
    tpu.vector_store %arg9[%c0_98, %c0_99], %166 {strides = array<i32>} : memref<48x16xf32, #tpu.memory_space<vmem>>, vector<16x16xf32>,
    %c1_100 = arith.constant 1 : index
    %c0_101 = arith.constant 0 : index
    %168 = memref.load %arg5[%c1_100, %c0_101] : memref<3x3xf32, #tpu.memory_space<smem>>
    %169 = vector.broadcast %168 : f32 to vector<16x16xf32>
    %170 = arith.mulf %169, %129 : vector<16x16xf32>
    %c1_102 = arith.constant 1 : index
    %c1_103 = arith.constant 1 : index
    %171 = memref.load %arg5[%c1_102, %c1_103] : memref<3x3xf32, #tpu.memory_space<smem>>
    %172 = vector.broadcast %171 : f32 to vector<16x16xf32>
    %173 = arith.mulf %172, %130 : vector<16x16xf32>
    %c1_104 = arith.constant 1 : index
    %c2_105 = arith.constant 2 : index
    %174 = memref.load %arg5[%c1_104, %c2_105] : memref<3x3xf32, #tpu.memory_space<smem>>
    %175 = vector.broadcast %174 : f32 to vector<16x16xf32>
    %176 = arith.mulf %175, %131 : vector<16x16xf32>
    %c1_106 = arith.constant 1 : index
    %c0_107 = arith.constant 0 : index
    %177 = memref.load %arg6[%c1_106, %c0_107] : memref<3x3xf32, #tpu.memory_space<smem>>
    %178 = vector.broadcast %177 : f32 to vector<16x16xf32>
    %179 = arith.mulf %178, %126 : vector<16x16xf32>
    %c1_108 = arith.constant 1 : index
    %c1_109 = arith.constant 1 : index
    %180 = memref.load %arg6[%c1_108, %c1_109] : memref<3x3xf32, #tpu.memory_space<smem>>
    %181 = vector.broadcast %180 : f32 to vector<16x16xf32>
    %182 = arith.mulf %181, %127 : vector<16x16xf32>
    %c1_110 = arith.constant 1 : index
    %c2_111 = arith.constant 2 : index
    %183 = memref.load %arg6[%c1_110, %c2_111] : memref<3x3xf32, #tpu.memory_space<smem>>
    %184 = vector.broadcast %183 : f32 to vector<16x16xf32>
    %185 = arith.mulf %184, %128 : vector<16x16xf32>
    %c1_112 = arith.constant 1 : index
    %c0_113 = arith.constant 0 : index
    %186 = memref.load %arg5[%c1_112, %c0_113] : memref<3x3xf32, #tpu.memory_space<smem>>
    %187 = vector.broadcast %186 : f32 to vector<16x16xf32>
    %188 = arith.mulf %187, %126 : vector<16x16xf32>
    %c1_114 = arith.constant 1 : index
    %c1_115 = arith.constant 1 : index
    %189 = memref.load %arg5[%c1_114, %c1_115] : memref<3x3xf32, #tpu.memory_space<smem>>
    %190 = vector.broadcast %189 : f32 to vector<16x16xf32>
    %191 = arith.mulf %190, %127 : vector<16x16xf32>
    %c1_116 = arith.constant 1 : index
    %c2_117 = arith.constant 2 : index
    %192 = memref.load %arg5[%c1_116, %c2_117] : memref<3x3xf32, #tpu.memory_space<smem>>
    %193 = vector.broadcast %192 : f32 to vector<16x16xf32>
    %194 = arith.mulf %193, %128 : vector<16x16xf32>
    %195 = arith.addf %170, %173 : vector<16x16xf32>
    %196 = arith.addf %176, %179 : vector<16x16xf32>
    %197 = arith.addf %182, %185 : vector<16x16xf32>
    %198 = arith.addf %195, %196 : vector<16x16xf32>
    %199 = arith.addf %198, %197 : vector<16x16xf32>
    %c16_118 = arith.constant 16 : index
    %c0_119 = arith.constant 0 : index
    %200 = vector.load %arg8[%c16_118, %c0_119] : memref<48x16xf32, #tpu.memory_space<vmem>>, vector<16x16xf32>
    tpu.vector_store %arg8[%c16_118, %c0_119], %199 {strides = array<i32>} : memref<48x16xf32, #tpu.memory_space<vmem>>, vector<16x16xf32>,
    %201 = arith.addf %188, %191 : vector<16x16xf32>
    %202 = arith.addf %201, %194 : vector<16x16xf32>
    %c16_120 = arith.constant 16 : index
    %c0_121 = arith.constant 0 : index
    %203 = vector.load %arg9[%c16_120, %c0_121] : memref<48x16xf32, #tpu.memory_space<vmem>>, vector<16x16xf32>
    tpu.vector_store %arg9[%c16_120, %c0_121], %202 {strides = array<i32>} : memref<48x16xf32, #tpu.memory_space<vmem>>, vector<16x16xf32>,
    %c2_122 = arith.constant 2 : index
    %c0_123 = arith.constant 0 : index
    %204 = memref.load %arg5[%c2_122, %c0_123] : memref<3x3xf32, #tpu.memory_space<smem>>
    %205 = vector.broadcast %204 : f32 to vector<16x16xf32>
    %206 = arith.mulf %205, %129 : vector<16x16xf32>
    %c2_124 = arith.constant 2 : index
    %c1_125 = arith.constant 1 : index
    %207 = memref.load %arg5[%c2_124, %c1_125] : memref<3x3xf32, #tpu.memory_space<smem>>
    %208 = vector.broadcast %207 : f32 to vector<16x16xf32>
    %209 = arith.mulf %208, %130 : vector<16x16xf32>
    %c2_126 = arith.constant 2 : index
    %c2_127 = arith.constant 2 : index
    %210 = memref.load %arg5[%c2_126, %c2_127] : memref<3x3xf32, #tpu.memory_space<smem>>
    %211 = vector.broadcast %210 : f32 to vector<16x16xf32>
    %212 = arith.mulf %211, %131 : vector<16x16xf32>
    %c2_128 = arith.constant 2 : index
    %c0_129 = arith.constant 0 : index
    %213 = memref.load %arg6[%c2_128, %c0_129] : memref<3x3xf32, #tpu.memory_space<smem>>
    %214 = vector.broadcast %213 : f32 to vector<16x16xf32>
    %215 = arith.mulf %214, %126 : vector<16x16xf32>
    %c2_130 = arith.constant 2 : index
    %c1_131 = arith.constant 1 : index
    %216 = memref.load %arg6[%c2_130, %c1_131] : memref<3x3xf32, #tpu.memory_space<smem>>
    %217 = vector.broadcast %216 : f32 to vector<16x16xf32>
    %218 = arith.mulf %217, %127 : vector<16x16xf32>
    %c2_132 = arith.constant 2 : index
    %c2_133 = arith.constant 2 : index
    %219 = memref.load %arg6[%c2_132, %c2_133] : memref<3x3xf32, #tpu.memory_space<smem>>
    %220 = vector.broadcast %219 : f32 to vector<16x16xf32>
    %221 = arith.mulf %220, %128 : vector<16x16xf32>
    %c2_134 = arith.constant 2 : index
    %c0_135 = arith.constant 0 : index
    %222 = memref.load %arg5[%c2_134, %c0_135] : memref<3x3xf32, #tpu.memory_space<smem>>
    %223 = vector.broadcast %222 : f32 to vector<16x16xf32>
    %224 = arith.mulf %223, %126 : vector<16x16xf32>
    %c2_136 = arith.constant 2 : index
    %c1_137 = arith.constant 1 : index
    %225 = memref.load %arg5[%c2_136, %c1_137] : memref<3x3xf32, #tpu.memory_space<smem>>
    %226 = vector.broadcast %225 : f32 to vector<16x16xf32>
    %227 = arith.mulf %226, %127 : vector<16x16xf32>
    %c2_138 = arith.constant 2 : index
    %c2_139 = arith.constant 2 : index
    %228 = memref.load %arg5[%c2_138, %c2_139] : memref<3x3xf32, #tpu.memory_space<smem>>
    %229 = vector.broadcast %228 : f32 to vector<16x16xf32>
    %230 = arith.mulf %229, %128 : vector<16x16xf32>
    %231 = arith.addf %206, %209 : vector<16x16xf32>
    %232 = arith.addf %212, %215 : vector<16x16xf32>
    %233 = arith.addf %218, %221 : vector<16x16xf32>
    %234 = arith.addf %231, %232 : vector<16x16xf32>
    %235 = arith.addf %234, %233 : vector<16x16xf32>
    %c32_140 = arith.constant 32 : index
    %c0_141 = arith.constant 0 : index
    %236 = vector.load %arg8[%c32_140, %c0_141] : memref<48x16xf32, #tpu.memory_space<vmem>>, vector<16x16xf32>
    tpu.vector_store %arg8[%c32_140, %c0_141], %235 {strides = array<i32>} : memref<48x16xf32, #tpu.memory_space<vmem>>, vector<16x16xf32>,
    %237 = arith.addf %224, %227 : vector<16x16xf32>
    %238 = arith.addf %237, %230 : vector<16x16xf32>
    %c32_142 = arith.constant 32 : index
    %c0_143 = arith.constant 0 : index
    %239 = vector.load %arg9[%c32_142, %c0_143] : memref<48x16xf32, #tpu.memory_space<vmem>>, vector<16x16xf32>
    tpu.vector_store %arg9[%c32_142, %c0_143], %238 {strides = array<i32>} : memref<48x16xf32, #tpu.memory_space<vmem>>, vector<16x16xf32>,
    %c0_144 = arith.constant 0 : index
    %c0_145 = arith.constant 0 : index
    %240 = vector.load %arg8[%c0_144, %c0_145] : memref<48x16xf32, #tpu.memory_space<vmem>>, vector<48x16xf32>
    %cst_146 = arith.constant dense<0.000000e+00> : vector<48x16xf32>
    %241 = tpu.matmul %240, %1, %cst_146 {dimension_numbers = #tpu.dot_dimension_numbers<[1], [0], [0], [1], [0, 0, 1, 1], [], []>} : vector<48x16xf32>, vector<16x16xf32>, vector<48x16xf32> -> vector<48x16xf32>
    %c0_147 = arith.constant 0 : index
    %c0_148 = arith.constant 0 : index
    %242 = vector.load %arg9[%c0_147, %c0_148] : memref<48x16xf32, #tpu.memory_space<vmem>>, vector<48x16xf32>
    %cst_149 = arith.constant dense<0.000000e+00> : vector<48x16xf32>
    %243 = tpu.matmul %242, %2, %cst_149 {dimension_numbers = #tpu.dot_dimension_numbers<[1], [0], [0], [1], [0, 0, 1, 1], [], []>} : vector<48x16xf32>, vector<16x16xf32>, vector<48x16xf32> -> vector<48x16xf32>
    %244 = arith.addf %241, %243 : vector<48x16xf32>
    %cst_150 = arith.constant 0.000000e+00 : f32
    %245 = vector.broadcast %cst_150 : f32 to vector<48x16xf32>
    %246 = arith.cmpf olt, %123, %245 : vector<48x16xf32>
    %cst_151 = arith.constant 0.000000e+00 : f32
    %247 = vector.broadcast %cst_151 : f32 to vector<48x16xf32>
    %248 = arith.cmpf olt, %244, %247 : vector<48x16xf32>
    %249 = arith.xori %246, %248 : vector<48x16xi1>
    %cst_152 = arith.constant 1.000000e+00 : f32
    %cst_153 = arith.constant 0.000000e+00 : f32
    %250 = vector.broadcast %cst_152 : f32 to vector<48x16xf32>
    %251 = vector.broadcast %cst_153 : f32 to vector<48x16xf32>
    %252 = arith.select %249, %250, %251 : vector<48x16xi1>, vector<48x16xf32>
    %253 = vector.shape_cast %252 : vector<48x16xf32> to vector<1x48x16xf32>
    %cst_154 = arith.constant dense<0.000000e+00> : vector<1xf32>
    %254 = vector.multi_reduction <add>, %253, %cst_154 [1, 2] : vector<1x48x16xf32> to vector<1xf32>
    %255 = vector.shape_cast %254 : vector<1xf32> to vector<1x1x1xf32>
    %256 = vector.extract %255[0, 0, 0] : f32 from vector<1x1x1xf32>
    %cst_155 = arith.constant 7.680000e+02 : f32
    %257 = arith.divf %256, %cst_155 : f32
    %c0_156 = arith.constant 0 : index
    %258 = memref.load %arg7[%c0_156] : memref<1xf32, #tpu.memory_space<smem>>
    memref.store %257, %arg7[%c0_156] : memref<1xf32, #tpu.memory_space<smem>>
    return
  }
}

</mosaic_0001>

<bundles_post_ra>
// kernel: tpu_custom_call.1
= control target key start
LH: loop header
LB: loop body
LE: loop exit
PB: predicated region body
PF: predicated region fallthrough
CT: control target
= control target key end

     0   :  { %12 = vsyncpa [#allocation5], 0  ;;  %s1790_s0 = inlined_call_operand.vmem [shape: f32[16,48], index: 0, kind: input, shape index: {}]   ;;  %s1791_s1 = inlined_call_operand.vmem [shape: f32[16,48], index: 1, kind: input, shape index: {}]   ;;  %s1792_s2 = inlined_call_operand.vmem [shape: f32[32,16], index: 2, kind: input, shape index: {}]   ;;  %s1793_s3 = inlined_call_operand.vmem [shape: f32[16,16], index: 3, kind: input, shape index: {}]   ;;  %s1794_s4 = inlined_call_operand.hbm [shape: f32[16,16], index: 4, kind: input, shape index: {}]   ;;  %s1795_s5 = inlined_call_operand.vmem [shape: f32[3,3], index: 5, kind: input, shape index: {}]   ;;  %s1796_s6 = inlined_call_operand.hbm [shape: f32[3,3], index: 6, kind: input, shape index: {}]   ;;  %s1797_s7 = inlined_call_operand.hbm [shape: f32[1], index: 7, kind: output, shape index: {}]  }
   0x1   :  { %13 = vsyncpa [#allocation8], 0 }
   0x2   :  { %14 = vsyncpa [#allocation6], 0 }
   0x3   :  { %15 = vsyncpa [#allocation7], 0  ;;  %s28_s26 = sshll.u32 %s1794_s4, 4  ;;  %s1237_s27 = smov [#allocation4]   ;;  %s29_s26 = int_to_ptr.hbm [resolvable:$true] %s28_s26 }
   0x4   :  { %s30_s28 = sshll.u32 %s1237_s27, 4  ;;  %s42_s8 = sshll.u32 %s1795_s5, 4  ;;  %s31_s28 = int_to_ptr.vmem [resolvable:$true] %s30_s28  ;;  %s43_s8 = int_to_ptr.vmem [resolvable:$true] %s42_s8 }
   0x5   :  { %s1238_s9 = smov 128   ;;  %s1239_s10 = smov 8  }
   0x6   :  { %36 = dma.hbm_to_vmem [thread:$0]  %s29_s26, 256, %s31_s28, [#allocation5], %s1238_s9, %s1238_s9, %s1239_s10  }
   0x7   :  { %s1240_s11 = smov [#allocation9]   ;;  %s51_s14 = sshll.u32 %s1796_s6, 4  ;;  %s52_s14 = int_to_ptr.hbm [resolvable:$true] %s51_s14 }
   0x8   :  { %45 = dma.vmem_to_smem %s43_s8, 64, %s1240_s11, [#allocation8]  }
   0x9   :  { %s1241_s4 = smov [#allocation10]  }
   0xa   :  { %54 = dma.hbm_to_smem %s52_s14, 64, %s1241_s4, [#allocation6]  }
   0xb   :  { %1229 = dma.done.wait [#allocation5], 256  }
   0xc   :  { %1230 = vsyncadd [#allocation5], 4294967040 }
   0xd   :  { %1231 = dma.done.wait [#allocation8], 64  }
   0xe   :  { %1232 = vsyncadd [#allocation8], 4294967232 }
   0xf   :  { %1233 = dma.done.wait [#allocation6], 64  }
  0x10   :  { %1234 = vsyncadd [#allocation6], 4294967232 }
  0x11   :  { %67 = sfence }
  0x12   :  { %v77_v0 = vld [vmem:[%s1790_s0 + $0x8] sm:$0xff]  ;;  %v76_v1 = vld [vmem:[%s1790_s0] sm:$0xff]  ;;  %vm78_vm0 = vcmask 130048   ;;  %v70_v3 = vld [vmem:[%s1792_s2 + $0x10] sm:$0xff]  ;;  %s1095_s28 = sld [smem:[#allocation10 + $0x80]]  ;;  %s1243_s9 = smov 112  }
  0x13   :  { %105 = vmatpush.msra.mxu0 %v77_v0  ;;  %v1306_v2 = vld [vmem:[%s1792_s2] sm:$0xff]  ;;  %1148 = vmatpush.msra.mxu1 %v77_v0  ;;  %v1317_v4 = vld [vmem:[%s1792_s2 + $0x8] sm:$0xff]  ;;  %v71_v5 = vld [vmem:[%s1792_s2 + $0x18] sm:$0xff]  ;;  %s132_s29 = sld [smem:[#allocation10]]  ;;  %s1244_s14 = smov 96  }
  0x14   :  { %v1328_v6 = vld [vmem:[%s1791_s1 + $0x8] sm:$0xff]  ;;  %v1333_v7 = vld [vmem:[%s1791_s1] sm:$0xff]  ;;  %s1097_s2 = sld [smem:[#allocation10 + $0x82]]  ;;  %s1242_s1 = smov 32  }
  0x15   :  { %106 = vmatpush.msra.mxu0 %v76_v1  ;;  %1149 = vmatpush.msra.mxu1 %v76_v1  ;;  %s1091_s30 = sld [smem:[#allocation10 + $0x2]]  ;;  %s1071_s25 = sshll.u32 %s1797_s7, 4  ;;  %s1072_s25 = int_to_ptr.hbm [resolvable:$true] %s1071_s25 }
  0x16   :  { %1084 = vmatmul.msk.f32.vlgmr.msra.gmra.mxu0 %vm78_vm0, %v1306_v2  ;;  %1086 = vmatmul.msk.f32.vlgmr.msra.gmra.mxu1 %vm78_vm0, %v70_v3  ;;  %s1101_s8 = sld [smem:[#allocation10 + $0x100]] }
  0x17   :  { %1150 = vmatpush.msra.mxu3 %v1328_v6  ;;  %s1103_s10 = sld [smem:[#allocation10 + $0x102]] }
  0x18   :  { %v1338_v8 = vstv %s1095_s28  ;;  %s1088_s11 = sld [smem:[#allocation9 + $0x1]] }
  0x19   :  { %1151 = vmatpush.msra.mxu3 %v1333_v7  ;;  %v1340_v9 = vstv %s132_s29  ;;  %s1089_s12 = sld [smem:[#allocation9 + $0x2]]  ;;  %s1247_s29 = smov [#allocation11]  }
  0x1a   :  { %1118 = vmatmul.msk.f32.vlgmr.msra.gmra.mxu3 %vm78_vm0, %v70_v3  ;;  %v1351_v13 = vstv %s1097_s2  ;;  %s1090_s13 = sld [smem:[#allocation10 + $0x1]] }
  0x1b   :  { %v1353_v14 = vstv %s1091_s30  ;;  %s1094_s4 = sld [smem:[#allocation9 + $0x82]] }
  0x1c   :  { %v1366_v19 = vstv %s1101_s8  ;;  %s1093_s5 = sld [smem:[#allocation9 + $0x81]] }
  0x1d   :  { %v1377_v23 = vstv %s1103_s10  ;;  %s1096_s15 = sld [smem:[#allocation10 + $0x81]] }
  0x1e   :  { %1085 = vmatmul.msk.f32.gmra.mxu0 %vm78_vm0, %v1317_v4  ;;  %1087 = vmatmul.msk.f32.gmra.mxu1 %vm78_vm0, %v71_v5  ;;  %v1390_v28 = vstv %s1088_s11  ;;  %s1100_s16 = sld [smem:[#allocation9 + $0x102]] }
  0x1f   :  { %v1398_v31 = vstv %s1089_s12  ;;  %s1099_s17 = sld [smem:[#allocation9 + $0x101]] }
  0x20   :  { %v1403_v35 = vstv %s1090_s13  ;;  %s1102_s6 = sld [smem:[#allocation10 + $0x101]] }
  0x21   :  { %v1416_v45 = vstv %s1094_s4  ;;  %s120_s21 = sld [smem:[#allocation9]] }
  0x22   :  { %1119 = vmatmul.msk.f32.gmra.mxu3 %vm78_vm0, %v71_v5  ;;  %v1422_v48 = vstv %s1093_s5  ;;  %s1098_s22 = sld [smem:[#allocation9 + $0x100]] }
  0x23   :  { %v1429_v54 = vstv %s1096_s15 }
  0x24   :  { %v1440_v63 = vstv %s1100_s16 }
  0x25   :  { %v1446_v3 = vstv %s1099_s17 }
  0x93   :  { %v1342_v10 = vpop.f32.mrf.mxu0  ;;  %v1388_v27 = vpop.f32.mrf.mxu1 }
  0x94   :  { %v238_v11 = vmul.f32 %v1338_v8, %v1342_v10  ;;  %v134_v12 = vmul.f32 %v1340_v9, %v1342_v10  ;;  %v246_v16 = vmul.f32 %v1351_v13, %v1342_v10  ;;  %v142_v17 = vmul.f32 %v1353_v14, %v1342_v10 }
  0x95   :  { %v342_v20 = vmul.f32 %v1366_v19, %v1342_v10  ;;  %v350_v25 = vmul.f32 %v1377_v23, %v1342_v10  ;;  %v126_v29 = vmul.f32 %v1390_v28, %v1388_v27  ;;  %v130_v32 = vmul.f32 %v1398_v31, %v1388_v27 }
  0x96   :  { %266 = vrot.lane.b32.xlu2 %v238_v11, %s1242_s1  ;;  %162 = vrot.lane.b32.xlu0 %v134_v12, %s1242_s1  ;;  %v138_v38 = vmul.f32 %v1403_v35, %v1342_v10  ;;  %v234_v46 = vmul.f32 %v1416_v45, %v1388_v27  ;;  %v230_v50 = vmul.f32 %v1422_v48, %v1388_v27 }
  0x97   :  { %v242_v56 = vmul.f32 %v1429_v54, %v1342_v10  ;;  %v338_v0 = vmul.f32 %v1440_v63, %v1388_v27  ;;  %v334_v5 = vmul.f32 %v1446_v3, %v1388_v27 }
  0x9b   :  { %v1355_v15 = vpop.f32.mrf.mxu0  ;;  %v1405_v36 = vpop.f32.mrf.mxu1 }
  0x9c   :  { %v135_v18 = vmul.f32 %v1340_v9, %v1355_v15  ;;  %v239_v21 = vmul.f32 %v1338_v8, %v1355_v15  ;;  %v143_v22 = vmul.f32 %v1353_v14, %v1355_v15  ;;  %v343_v24 = vmul.f32 %v1366_v19, %v1355_v15 }
  0x9d   :  { %v247_v26 = vmul.f32 %v1351_v13, %v1355_v15  ;;  %v351_v30 = vmul.f32 %v1377_v23, %v1355_v15  ;;  %v131_v37 = vmul.f32 %v1398_v31, %v1405_v36  ;;  %v127_v39 = vmul.f32 %v1390_v28, %v1405_v36 }
  0x9e   :  { %276 = vrot.lane.b32.xlu2 %v246_v16, %s1243_s9  ;;  %172 = vrot.lane.b32.xlu0 %v142_v17, %s1243_s9  ;;  %v139_v47 = vmul.f32 %v1403_v35, %v1355_v15  ;;  %v235_v57 = vmul.f32 %v1416_v45, %v1405_v36  ;;  %v231_v58 = vmul.f32 %v1422_v48, %v1405_v36  ;;  %v1450_v16 = vpop.f32.mrf.mxu3  ;;  %v1455_v17 = vstv %s1102_s6 }
  0x9f   :  { %164 = vrot.lane.b32.xlu1 %v135_v18, %s1242_s1  ;;  %v243_v1 = vmul.f32 %v1429_v54, %v1355_v15 }
  0xa6   :  { %370 = vrot.lane.b32.xlu2 %v342_v20, %s1242_s1  ;;  %268 = vrot.lane.b32.xlu0 %v239_v21, %s1242_s1  ;;  %v339_v20 = vmul.f32 %v1440_v63, %v1405_v36 }
  0xa7   :  { %174 = vrot.lane.b32.xlu1 %v143_v22, %s1243_s9 }
  0xae   :  { %372 = vrot.lane.b32.xlu2 %v343_v24, %s1242_s1  ;;  %380 = vrot.lane.b32.xlu0 %v350_v25, %s1243_s9  ;;  %v346_v24 = vmul.f32 %v1455_v17, %v1342_v10  ;;  %v335_v25 = vmul.f32 %v1446_v3, %v1405_v36 }
  0xaf   :  { %278 = vrot.lane.b32.xlu1 %v247_v26, %s1243_s9 }
  0xb7   :  { %152 = vrot.lane.b32.xlu1 %v126_v29, %s1243_s9 }
  0xbf   :  { %382 = vrot.lane.b32.xlu1 %v351_v30, %s1243_s9  ;;  %v1466_v30 = vpop.f32.mrf.mxu3 }
  0xf0   :  { %v267_v41 = vpop.permute.xlu2 %266 }
  0xf1   :  { %v272_v51 = vadd.f32 %v267_v41, %v234_v46  ;;  %v148_v41 = vmul.f32 %v1398_v31, %v1342_v10  ;;  %v149_v46 = vmul.f32 %v1398_v31, %v1355_v15 }
  0xf8   :  { %v277_v53 = vpop.permute.xlu2 %276 }
  0xf9   :  { %v282_v59 = vadd.f32 %v277_v53, %v242_v56 }
 0x100   :  { %v371_v62 = vpop.permute.xlu2 %370 }
 0x101   :  { %v376_v11 = vadd.f32 %v371_v62, %v338_v0 }
 0x108   :  { %v163_v33 = vpop.permute.xlu0 %162  ;;  %v373_v21 = vpop.permute.xlu2 %372 }
 0x109   :  { %v168_v34 = vadd.f32 %v163_v33, %v130_v32  ;;  %v377_v26 = vadd.f32 %v373_v21, %v339_v20  ;;  %v588_v33 = vmul.f32 %v1466_v30, %v1390_v28 }
 0x10b   :  { %182 = vrot.lane.b32.xlu0 %v168_v34, %s1244_s14  ;;  %v347_v34 = vmul.f32 %v1455_v17, %v1355_v15 }
 0x110   :  { %v173_v40 = vpop.permute.xlu0 %172 }
 0x111   :  { %v178_v42 = vadd.f32 %v173_v40, %v138_v38  ;;  %v165_v43 = vpop.permute.xlu1 %164  ;;  %v146_v38 = vmul.f32 %v1390_v28, %v1342_v10  ;;  %v250_v40 = vmul.f32 %v1422_v48, %v1342_v10 }
 0x112   :  { %v169_v44 = vadd.f32 %v165_v43, %v131_v37  ;;  %v251_v43 = vmul.f32 %v1422_v48, %v1355_v15 }
 0x113   :  { %192 = vrot.lane.b32.xlu2 %v178_v42, %s1243_s9  ;;  %154 = vrot.lane.b32.xlu0 %v127_v39, %s1243_s9  ;;  %v587_v39 = vmul.f32 %v1450_v16, %v1390_v28  ;;  %v252_v42 = vmul.f32 %v1416_v45, %v1342_v10 }
 0x114   :  { %184 = vrot.lane.b32.xlu1 %v169_v44, %s1244_s14  ;;  %v147_v44 = vmul.f32 %v1390_v28, %v1355_v15 }
 0x118   :  { %v269_v55 = vpop.permute.xlu0 %268 }
 0x119   :  { %v175_v49 = vpop.permute.xlu1 %174  ;;  %v273_v60 = vadd.f32 %v269_v55, %v235_v57 }
 0x11a   :  { %v179_v52 = vadd.f32 %v175_v49, %v139_v47  ;;  %v73_v47 = vld [vmem:[%s1793_s3 + $0x8] sm:$0xff]  ;;  %v72_v49 = vld [vmem:[%s1793_s3] sm:$0xff]  ;;  %s1092_s3 = sld [smem:[#allocation9 + $0x80]] }
 0x11b   :  { %256 = vrot.lane.b32.xlu0 %v230_v50, %s1243_s9  ;;  %529 = vmatpush.msra.mxu2 %v73_v47 }
 0x11c   :  { %286 = vrot.lane.b32.xlu1 %v272_v51, %s1244_s14  ;;  %194 = vrot.lane.b32.xlu2 %v179_v52, %s1243_s9  ;;  %v1506_v52 = vstv %s120_s21 }
 0x11d   :  { %990 = vmatpush.msrb.mxu3 %v73_v47  ;;  %530 = vmatpush.msra.mxu2 %v72_v49  ;;  %v122_v53 = vmul.f32 %v1506_v52, %v1388_v27 }
 0x11f   :  { %991 = vmatpush.msrb.mxu3 %v72_v49  ;;  %566 = vmatpush.msrb.mxu2 %v1328_v6  ;;  %v123_v6 = vmul.f32 %v1506_v52, %v1405_v36 }
 0x120   :  { %v381_v22 = vpop.permute.xlu0 %380 }
 0x121   :  { %v279_v61 = vpop.permute.xlu1 %278  ;;  %v386_v29 = vadd.f32 %v381_v22, %v346_v24  ;;  %567 = vmatpush.msrb.mxu2 %v1333_v7 }
 0x122   :  { %v283_v12 = vadd.f32 %v279_v61, %v243_v1 }
 0x123   :  { %258 = vrot.lane.b32.xlu0 %v231_v58, %s1243_s9 }
 0x124   :  { %288 = vrot.lane.b32.xlu1 %v273_v60, %s1244_s14  ;;  %296 = vrot.lane.b32.xlu2 %v282_v59, %s1243_s9 }
 0x129   :  { %v153_v18 = vpop.permute.xlu1 %152 }
 0x12a   :  { %v158_v55 = vadd.f32 %v153_v18, %v122_v53 }
 0x12b   :  { %360 = vrot.lane.b32.xlu0 %v334_v5, %s1243_s9 }
 0x12c   :  { %390 = vrot.lane.b32.xlu1 %v376_v11, %s1244_s14  ;;  %298 = vrot.lane.b32.xlu2 %v283_v12, %s1243_s9  ;;  %v1514_v11 = vstv %s1092_s3 }
 0x12d   :  { %v226_v12 = vmul.f32 %v1514_v11, %v1388_v27 }
 0x131   :  { %v383_v32 = vpop.permute.xlu1 %382 }
 0x132   :  { %v387_v37 = vadd.f32 %v383_v32, %v347_v34 }
 0x133   :  { %362 = vrot.lane.b32.xlu0 %v335_v25, %s1243_s9 }
 0x134   :  { %392 = vrot.lane.b32.xlu1 %v377_v26, %s1244_s14  ;;  %400 = vrot.lane.b32.xlu2 %v386_v29, %s1243_s9  ;;  %v227_v29 = vmul.f32 %v1514_v11, %v1405_v36 }
 0x13b   :  { %615 = vrot.lane.b32.xlu0 %v588_v33, %s1243_s9 }
 0x13c   :  { %204 = vrot.lane.b32.xlu1 %v146_v38, %s1243_s9  ;;  %402 = vrot.lane.b32.xlu2 %v387_v37, %s1243_s9 }
 0x143   :  { %308 = vrot.lane.b32.xlu0 %v250_v40, %s1243_s9 }
 0x144   :  { %214 = vrot.lane.b32.xlu1 %v148_v41, %s1244_s14  ;;  %613 = vrot.lane.b32.xlu2 %v587_v39, %s1243_s9  ;;  %v1523_v41 = vstv %s1098_s22 }
 0x14b   :  { %318 = vrot.lane.b32.xlu0 %v252_v42, %s1244_s14  ;;  %v330_v42 = vmul.f32 %v1523_v41, %v1388_v27  ;;  %v331_v27 = vmul.f32 %v1523_v41, %v1405_v36 }
 0x14c   :  { %310 = vrot.lane.b32.xlu1 %v251_v43, %s1243_s9  ;;  %206 = vrot.lane.b32.xlu2 %v147_v44, %s1243_s9  ;;  %v75_v43 = vld [vmem:[#allocation4 + $0x8] sm:$0xff] }
 0x14d   :  { %476 = vmatpush.msrb.mxu1 %v75_v43  ;;  %937 = vmatpush.msrb.mxu0 %v75_v43 }
 0x154   :  { %216 = vrot.lane.b32.xlu2 %v149_v46, %s1244_s14 }
 0x16d   :  { %v193_v50 = vpop.permute.xlu2 %192 }
 0x176   :  { %v195_v51 = vpop.permute.xlu2 %194 }
 0x17d   :  { %v183_v56 = vpop.permute.xlu0 %182 }
 0x17e   :  { %v188_v57 = vadd.f32 %v183_v56, %v158_v55  ;;  %v297_v58 = vpop.permute.xlu2 %296 }
 0x180   :  { %v198_v59 = vadd.f32 %v193_v50, %v188_v57 }
 0x182   :  { %200 = vst.msk [vmem:[#allocation2] sm:$0xff] %vm78_vm0, %v198_v59 }
 0x185   :  { %v155_v60 = vpop.permute.xlu0 %154 }
 0x186   :  { %v159_v7 = vadd.f32 %v155_v60, %v123_v6  ;;  %v299_v61 = vpop.permute.xlu2 %298  ;;  %v185_v62 = vpop.permute.xlu1 %184  ;;  %v691_v60 = vmul.f32 %v1450_v16, %v1422_v48 }
 0x188   :  { %v189_v0 = vadd.f32 %v185_v62, %v159_v7  ;;  %717 = vrot.lane.b32.xlu2 %v691_v60, %s1243_s9 }
 0x189   :  { %v432_v1 = vld [vmem:[#allocation2] sm:$0xff] }
 0x18a   :  { %v199_v5 = vadd.f32 %v195_v51, %v189_v0  ;;  %1110 = vmatmul.msk.f32.vlgmr.msra.gmra.mxu2 %vm78_vm0, %v432_v1  ;;  %v74_v51 = vld [vmem:[#allocation4] sm:$0xff] }
 0x18b   :  { %477 = vmatpush.msrb.mxu1 %v74_v51  ;;  %938 = vmatpush.msrb.mxu0 %v74_v51 }
 0x18c   :  { %201 = vst.msk [vmem:[#allocation2 + $0x8] sm:$0xff] %vm78_vm0, %v199_v5 }
 0x18d   :  { %v257_v18 = vpop.permute.xlu0 %256 }
 0x18e   :  { %v262_v20 = vadd.f32 %v257_v18, %v226_v12  ;;  %v401_v21 = vpop.permute.xlu2 %400  ;;  %v287_v22 = vpop.permute.xlu1 %286  ;;  %v144_v18 = vmul.f32 %v1506_v52, %v1342_v10 }
 0x190   :  { %v292_v24 = vadd.f32 %v287_v22, %v262_v20 }
 0x192   :  { %v302_v25 = vadd.f32 %v297_v58, %v292_v24 }
 0x193   :  { %v433_v26 = vld [vmem:[#allocation2 + $0x8] sm:$0xff] }
 0x194   :  { %304 = vst.msk [vmem:[#allocation2 + $0x10] sm:$0xff] %vm78_vm0, %v302_v25  ;;  %1111 = vmatmul.msk.f32.gmra.mxu2 %vm78_vm0, %v433_v26  ;;  %v248_v26 = vmul.f32 %v1514_v11, %v1342_v10 }
 0x195   :  { %v259_v32 = vpop.permute.xlu0 %258 }
 0x196   :  { %v263_v33 = vadd.f32 %v259_v32, %v227_v29  ;;  %v403_v34 = vpop.permute.xlu2 %402  ;;  %v289_v37 = vpop.permute.xlu1 %288 }
 0x198   :  { %v293_v38 = vadd.f32 %v289_v37, %v263_v33 }
 0x19a   :  { %v303_v39 = vadd.f32 %v299_v61, %v293_v38  ;;  %v145_v61 = vmul.f32 %v1506_v52, %v1355_v15 }
 0x19b   :  { %v434_v40 = vld [vmem:[#allocation2 + $0x10] sm:$0xff] }
 0x19c   :  { %305 = vst.msk [vmem:[#allocation2 + $0x18] sm:$0xff] %vm78_vm0, %v303_v39  ;;  %1112 = vmatmul.msk.f32.gmra.mxu2 %vm78_vm0, %v434_v40 }
 0x19d   :  { %v361_v44 = vpop.permute.xlu0 %360 }
 0x19e   :  { %v366_v46 = vadd.f32 %v361_v44, %v330_v42  ;;  %v1529_v47 = vpop.permute.xlu2 %613  ;;  %v391_v49 = vpop.permute.xlu1 %390 }
 0x1a0   :  { %v396_v50 = vadd.f32 %v391_v49, %v366_v46 }
 0x1a2   :  { %v406_v53 = vadd.f32 %v401_v21, %v396_v50 }
 0x1a3   :  { %v435_v55 = vld [vmem:[#allocation2 + $0x18] sm:$0xff] }
 0x1a4   :  { %408 = vst.msk [vmem:[#allocation2 + $0x20] sm:$0xff] %vm78_vm0, %v406_v53  ;;  %1113 = vmatmul.msk.f32.gmra.mxu2 %vm78_vm0, %v435_v55 }
 0x1a5   :  { %v363_v56 = vpop.permute.xlu0 %362 }
 0x1a6   :  { %v367_v57 = vadd.f32 %v363_v56, %v331_v27  ;;  %v207_v58 = vpop.permute.xlu2 %206  ;;  %v393_v59 = vpop.permute.xlu1 %392 }
 0x1a7   :  { %v211_v36 = vadd.f32 %v207_v58, %v145_v61  ;;  %v354_v61 = vmul.f32 %v1446_v3, %v1342_v10 }
 0x1a8   :  { %v397_v6 = vadd.f32 %v393_v59, %v367_v57 }
 0x1aa   :  { %v407_v7 = vadd.f32 %v403_v34, %v397_v6  ;;  %v692_v6 = vmul.f32 %v1466_v30, %v1422_v48 }
 0x1ab   :  { %v436_v62 = vld [vmem:[#allocation2 + $0x20] sm:$0xff] }
 0x1ac   :  { %409 = vst.msk [vmem:[#allocation2 + $0x28] sm:$0xff] %vm78_vm0, %v407_v7  ;;  %1114 = vmatmul.msk.f32.gmra.mxu2 %vm78_vm0, %v436_v62  ;;  %v253_v7 = vmul.f32 %v1416_v45, %v1355_v15 }
 0x1ad   :  { %v1542_v0 = vpop.permute.xlu0 %615 }
 0x1ae   :  { %v217_v1 = vpop.permute.xlu2 %216  ;;  %v205_v5 = vpop.permute.xlu1 %204 }
 0x1af   :  { %v221_v12 = vadd.f32 %v217_v1, %v211_v36  ;;  %v210_v21 = vadd.f32 %v205_v5, %v144_v18 }
 0x1b1   :  { %223 = vst.msk [vmem:[#allocation3 + $0x8] sm:$0xff] %vm78_vm0, %v221_v12 }
 0x1b3   :  { %v437_v20 = vld [vmem:[#allocation2 + $0x28] sm:$0xff] }
 0x1b4   :  { %1115 = vmatmul.msk.f32.gmra.mxu2 %vm78_vm0, %v437_v20  ;;  %v592_v20 = vmul.f32 %v1466_v30, %v1398_v31 }
 0x1b5   :  { %v309_v22 = vpop.permute.xlu0 %308 }
 0x1b6   :  { %v215_v24 = vpop.permute.xlu1 %214  ;;  %v314_v29 = vadd.f32 %v309_v22, %v248_v26 }
 0x1b7   :  { %v220_v25 = vadd.f32 %v215_v24, %v210_v21 }
 0x1b8   :  { %v439_v37 = vld [vmem:[#allocation3 + $0x8] sm:$0xff] }
 0x1b9   :  { %222 = vst.msk [vmem:[#allocation3] sm:$0xff] %vm78_vm0, %v220_v25  ;;  %v591_v25 = vmul.f32 %v1450_v16, %v1398_v31 }
 0x1bc   :  { %1116 = vmatmul.msk.f32.vlgmr.msrb.gmra.mxu2 %vm78_vm0, %v1306_v2 }
 0x1bd   :  { %v319_v32 = vpop.permute.xlu0 %318 }
 0x1be   :  { %v324_v33 = vadd.f32 %v319_v32, %v314_v29  ;;  %v311_v21 = vpop.permute.xlu1 %310 }
 0x1c0   :  { %326 = vst.msk [vmem:[#allocation3 + $0x10] sm:$0xff] %vm78_vm0, %v324_v33  ;;  %v438_v34 = vld [vmem:[#allocation3] sm:$0xff] }
 0x1c1   :  { %1104 = vmatmul.msk.f32.vlgmr.msrb.gmra.mxu1 %vm78_vm0, %v438_v34 }
 0x1c4   :  { %1117 = vmatmul.msk.f32.gmra.mxu2 %vm78_vm0, %v1317_v4 }
 0x1c7   :  { %v440_v38 = vld [vmem:[#allocation3 + $0x10] sm:$0xff] }
 0x1c9   :  { %1105 = vmatmul.msk.f32.gmra.mxu1 %vm78_vm0, %v439_v37  ;;  %v695_v37 = vmul.f32 %v1450_v16, %v1416_v45 }
 0x1d1   :  { %1106 = vmatmul.msk.f32.gmra.mxu1 %vm78_vm0, %v440_v38 }
 0x1e2   :  { %v1638_v5 = vpop.permute.xlu2 %717 }
 0x20d   :  { %v1559_v39 = vpop.f32.mrf.mxu2 }
 0x217   :  { %v1561_v40 = vpop.f32.mrf.mxu2 }
 0x21f   :  { %v1563_v2 = vpop.f32.mrf.mxu2 }
 0x227   :  { %v1565_v42 = vpop.f32.mrf.mxu2 }
 0x22f   :  { %v1567_v43 = vpop.f32.mrf.mxu2 }
 0x237   :  { %v1569_v44 = vpop.f32.mrf.mxu2 }
 0x23f   :  { %v1571_v46 = vpop.f32.mrf.mxu2 }
 0x240   :  { %v707_v4 = vmul.f32 %v1571_v46, %v1351_v13  ;;  %v603_v49 = vmul.f32 %v1571_v46, %v1353_v14  ;;  %v595_v50 = vmul.f32 %v1571_v46, %v1340_v9  ;;  %v803_v51 = vmul.f32 %v1571_v46, %v1366_v19 }
 0x241   :  { %v699_v53 = vmul.f32 %v1571_v46, %v1338_v8  ;;  %v811_v55 = vmul.f32 %v1571_v46, %v1377_v23  ;;  %v607_v57 = vmul.f32 %v1571_v46, %v1390_v28  ;;  %v711_v58 = vmul.f32 %v1571_v46, %v1422_v48 }
 0x242   :  { %737 = vrot.lane.b32.xlu2 %v707_v4, %s1243_s9  ;;  %633 = vrot.lane.b32.xlu1 %v603_v49, %s1243_s9  ;;  %v609_v59 = vmul.f32 %v1571_v46, %v1398_v31  ;;  %v599_v24 = vmul.f32 %v1571_v46, %v1403_v35 }
 0x243   :  { %623 = vrot.lane.b32.xlu0 %v595_v50, %s1242_s1  ;;  %v795_v50 = vmul.f32 %v1450_v16, %v1446_v3 }
 0x247   :  { %v1591_v27 = vpop.f32.mrf.mxu2 }
 0x248   :  { %v596_v56 = vmul.f32 %v1591_v27, %v1340_v9  ;;  %v713_v9 = vmul.f32 %v1571_v46, %v1416_v45  ;;  %v604_v60 = vmul.f32 %v1591_v27, %v1353_v14  ;;  %v708_v62 = vmul.f32 %v1591_v27, %v1351_v13 }
 0x249   :  { %v700_v36 = vmul.f32 %v1591_v27, %v1338_v8  ;;  %v608_v14 = vmul.f32 %v1591_v27, %v1390_v28  ;;  %v804_v1 = vmul.f32 %v1591_v27, %v1366_v19  ;;  %v610_v13 = vmul.f32 %v1591_v27, %v1398_v31 }
 0x24a   :  { %831 = vrot.lane.b32.xlu2 %v803_v51, %s1242_s1  ;;  %727 = vrot.lane.b32.xlu1 %v699_v53, %s1242_s1  ;;  %v812_v8 = vmul.f32 %v1591_v27, %v1377_v23  ;;  %v703_v28 = vmul.f32 %v1571_v46, %v1429_v54  ;;  %v712_v33 = vmul.f32 %v1591_v27, %v1422_v48 }
 0x24b   :  { %841 = vrot.lane.b32.xlu0 %v811_v55, %s1243_s9  ;;  %v714_v31 = vmul.f32 %v1591_v27, %v1416_v45  ;;  %v799_v48 = vmul.f32 %v1450_v16, %v1440_v63 }
 0x252   :  { %665 = vrot.lane.b32.xlu1 %v607_v57, %s1243_s9  ;;  %625 = vrot.lane.b32.xlu2 %v596_v56, %s1242_s1  ;;  %v355_v56 = vmul.f32 %v1446_v3, %v1355_v15  ;;  %v356_v57 = vmul.f32 %v1440_v63, %v1342_v10 }
 0x253   :  { %769 = vrot.lane.b32.xlu0 %v711_v58, %s1243_s9  ;;  %v605_v58 = vmul.f32 %v1571_v46, %v1506_v52 }
 0x25a   :  { %675 = vrot.lane.b32.xlu1 %v609_v59, %s1244_s14  ;;  %719 = vrot.lane.b32.xlu2 %v692_v6, %s1243_s9  ;;  %v709_v59 = vmul.f32 %v1571_v46, %v1514_v11 }
 0x25b   :  { %779 = vrot.lane.b32.xlu0 %v713_v9, %s1244_s14 }
 0x262   :  { %320 = vrot.lane.b32.xlu1 %v253_v7, %s1244_s14  ;;  %412 = vrot.lane.b32.xlu2 %v354_v61, %s1243_s9 }
 0x263   :  { %635 = vrot.lane.b32.xlu0 %v604_v60, %s1243_s9 }
 0x26a   :  { %739 = vrot.lane.b32.xlu1 %v708_v62, %s1243_s9  ;;  %v357_v62 = vmul.f32 %v1440_v63, %v1355_v15 }
 0x26b   :  { %729 = vrot.lane.b32.xlu0 %v700_v36, %s1242_s1 }
 0x272   :  { %667 = vrot.lane.b32.xlu1 %v608_v14, %s1243_s9  ;;  %v249_v14 = vmul.f32 %v1514_v11, %v1355_v15 }
 0x273   :  { %833 = vrot.lane.b32.xlu0 %v804_v1, %s1242_s1 }
 0x274   :  { %v315_v1 = vadd.f32 %v311_v21, %v249_v14  ;;  %v807_v21 = vmul.f32 %v1571_v46, %v1455_v17 }
 0x27a   :  { %677 = vrot.lane.b32.xlu1 %v610_v13, %s1244_s14  ;;  %v600_v13 = vmul.f32 %v1591_v27, %v1403_v35 }
 0x27b   :  { %843 = vrot.lane.b32.xlu0 %v812_v8, %s1243_s9 }
 0x29c   :  { %v738_v19 = vpop.permute.xlu2 %737 }
 0x29d   :  { %v743_v12 = vadd.f32 %v738_v19, %v703_v28 }
 0x29f   :  { %757 = vrot.lane.b32.xlu0 %v743_v12, %s1243_s9 }
 0x2a4   :  { %v832_v18 = vpop.permute.xlu2 %831 }
 0x2a5   :  { %v837_v53 = vadd.f32 %v832_v18, %v799_v48 }
 0x2ac   :  { %v626_v22 = vpop.permute.xlu2 %625 }
 0x2ad   :  { %v630_v23 = vadd.f32 %v626_v22, %v592_v20  ;;  %v704_v20 = vmul.f32 %v1591_v27, %v1429_v54  ;;  %v796_v54 = vmul.f32 %v1466_v30, %v1446_v3 }
 0x2af   :  { %645 = vrot.lane.b32.xlu0 %v630_v23, %s1244_s14 }
 0x2b4   :  { %v634_v26 = vpop.permute.xlu1 %633 }
 0x2b5   :  { %v624_v29 = vpop.permute.xlu0 %623  ;;  %v639_v32 = vadd.f32 %v634_v26, %v599_v24  ;;  %v696_v26 = vmul.f32 %v1466_v30, %v1416_v45  ;;  %v808_v45 = vmul.f32 %v1591_v27, %v1455_v17  ;;  %v817_v17 = vmul.f32 %v1571_v46, %v1440_v63 }
 0x2b6   :  { %v629_v34 = vadd.f32 %v624_v29, %v591_v25 }
 0x2b7   :  { %771 = vrot.lane.b32.xlu0 %v712_v33, %s1243_s9  ;;  %653 = vrot.lane.b32.xlu1 %v639_v32, %s1243_s9 }
 0x2b8   :  { %643 = vrot.lane.b32.xlu2 %v629_v34, %s1244_s14  ;;  %v606_v34 = vmul.f32 %v1591_v27, %v1506_v52 }
 0x2bc   :  { %v728_v38 = vpop.permute.xlu1 %727 }
 0x2bd   :  { %v842_v4 = vpop.permute.xlu0 %841  ;;  %v733_v49 = vadd.f32 %v728_v38, %v695_v37  ;;  %v800_v37 = vmul.f32 %v1466_v30, %v1440_v63 }
 0x2be   :  { %v847_v24 = vadd.f32 %v842_v4, %v807_v21  ;;  %v710_v21 = vmul.f32 %v1591_v27, %v1514_v11 }
 0x2bf   :  { %781 = vrot.lane.b32.xlu0 %v714_v31, %s1244_s14  ;;  %821 = vrot.lane.b32.xlu1 %v795_v50, %s1243_s9 }
 0x2c0   :  { %747 = vrot.lane.b32.xlu2 %v733_v49, %s1244_s14 }
 0x2c4   :  { %v666_v51 = vpop.permute.xlu1 %665 }
 0x2c5   :  { %v770_v55 = vpop.permute.xlu0 %769  ;;  %v671_v6 = vadd.f32 %v666_v51, %v605_v58  ;;  %v815_v51 = vmul.f32 %v1571_v46, %v1446_v3  ;;  %v1724_v58 = vpop.permute.xlu2 %719 }
 0x2c6   :  { %v775_v9 = vadd.f32 %v770_v55, %v709_v59 }
 0x2c7   :  { %414 = vrot.lane.b32.xlu0 %v355_v56, %s1243_s9  ;;  %851 = vrot.lane.b32.xlu1 %v837_v53, %s1244_s14  ;;  %v816_v53 = vmul.f32 %v1591_v27, %v1446_v3  ;;  %v818_v56 = vmul.f32 %v1591_v27, %v1440_v63  ;;  %v352_v63 = vmul.f32 %v1523_v41, %v1342_v10 }
 0x2c8   :  { %422 = vrot.lane.b32.xlu2 %v356_v57, %s1244_s14  ;;  %v584_v10 = vmul.f32 %v1466_v30, %v1506_v52 }
 0x2cc   :  { %v676_v60 = vpop.permute.xlu1 %675 }
 0x2cd   :  { %v780_v7 = vpop.permute.xlu0 %779  ;;  %v681_v61 = vadd.f32 %v676_v60, %v671_v6  ;;  %v413_v3 = vpop.permute.xlu2 %412  ;;  %v687_v6 = vmul.f32 %v1450_v16, %v1514_v11 }
 0x2ce   :  { %v785_v36 = vadd.f32 %v780_v7, %v775_v9 }
 0x2cf   :  { %683 = vst.msk [vmem:[#allocation3] sm:$0xff] %vm78_vm0, %v681_v61  ;;  %424 = vrot.lane.b32.xlu0 %v357_v62, %s1244_s14  ;;  %v723_v9 = vadd.f32 %v1638_v5, %v687_v6 }
 0x2d0   :  { %787 = vst.msk [vmem:[#allocation3 + $0x10] sm:$0xff] %vm78_vm0, %v785_v36  ;;  %v418_v36 = vadd.f32 %v413_v3, %v352_v63 }
 0x2d4   :  { %v321_v8 = vpop.permute.xlu1 %320 }
 0x2d5   :  { %v636_v28 = vpop.permute.xlu0 %635  ;;  %v325_v19 = vadd.f32 %v321_v8, %v315_v1  ;;  %v583_v1 = vmul.f32 %v1450_v16, %v1506_v52  ;;  %v791_v52 = vmul.f32 %v1450_v16, %v1523_v41 }
 0x2d6   :  { %v640_v12 = vadd.f32 %v636_v28, %v600_v13  ;;  %v899_v18 = vld [vmem:[#allocation3] sm:$0xff] }
 0x2d7   :  { %327 = vst.msk [vmem:[#allocation3 + $0x18] sm:$0xff] %vm78_vm0, %v325_v19  ;;  %1136 = vmatmul.msk.f32.vlgmr.msrb.gmra.mxu0 %vm78_vm0, %v899_v18  ;;  %v901_v57 = vld [vmem:[#allocation3 + $0x10] sm:$0xff]  ;;  %v619_v5 = vadd.f32 %v1529_v47, %v583_v1 }
 0x2d8   :  { %655 = vrot.lane.b32.xlu2 %v640_v12, %s1243_s9 }
 0x2dc   :  { %v740_v22 = vpop.permute.xlu1 %739 }
 0x2dd   :  { %v730_v23 = vpop.permute.xlu0 %729  ;;  %v744_v35 = vadd.f32 %v740_v22, %v704_v20  ;;  %v620_v22 = vadd.f32 %v1542_v0, %v584_v10 }
 0x2de   :  { %v441_v25 = vld [vmem:[#allocation3 + $0x18] sm:$0xff]  ;;  %v734_v33 = vadd.f32 %v730_v23, %v696_v26 }
 0x2df   :  { %1107 = vmatmul.msk.f32.gmra.mxu1 %vm78_vm0, %v441_v25  ;;  %759 = vrot.lane.b32.xlu1 %v744_v35, %s1243_s9 }
 0x2e0   :  { %861 = vrot.lane.b32.xlu2 %v847_v24, %s1243_s9 }
 0x2e4   :  { %v668_v29 = vpop.permute.xlu1 %667 }
 0x2e5   :  { %v834_v32 = vpop.permute.xlu0 %833  ;;  %v672_v38 = vadd.f32 %v668_v29, %v606_v34 }
 0x2e6   :  { %v838_v49 = vadd.f32 %v834_v32, %v800_v37 }
 0x2e7   :  { %823 = vrot.lane.b32.xlu1 %v796_v54, %s1243_s9 }
 0x2e8   :  { %749 = vrot.lane.b32.xlu2 %v734_v33, %s1244_s14 }
 0x2ec   :  { %v678_v4 = vpop.permute.xlu1 %677 }
 0x2ed   :  { %v844_v31 = vpop.permute.xlu0 %843  ;;  %v682_v50 = vadd.f32 %v678_v4, %v672_v38 }
 0x2ee   :  { %v848_v48 = vadd.f32 %v844_v31, %v808_v45 }
 0x2ef   :  { %684 = vst.msk [vmem:[#allocation3 + $0x8] sm:$0xff] %vm78_vm0, %v682_v50  ;;  %853 = vrot.lane.b32.xlu1 %v838_v49, %s1244_s14  ;;  %v353_v49 = vmul.f32 %v1523_v41, %v1355_v15 }
 0x2f0   :  { %863 = vrot.lane.b32.xlu0 %v848_v48, %s1243_s9  ;;  %873 = vrot.lane.b32.xlu2 %v815_v51, %s1243_s9 }
 0x2f6   :  { %v900_v55 = vld [vmem:[#allocation3 + $0x8] sm:$0xff] }
 0x2f7   :  { %875 = vrot.lane.b32.xlu1 %v816_v53, %s1243_s9  ;;  %1137 = vmatmul.msk.f32.gmra.mxu0 %vm78_vm0, %v900_v55  ;;  %v688_v55 = vmul.f32 %v1466_v30, %v1514_v11 }
 0x2f8   :  { %883 = vrot.lane.b32.xlu2 %v817_v17, %s1244_s14 }
 0x2f9   :  { %v724_v15 = vadd.f32 %v1724_v58, %v688_v55 }
 0x2ff   :  { %1138 = vmatmul.msk.f32.gmra.mxu0 %vm78_vm0, %v901_v57 }
 0x300   :  { %885 = vrot.lane.b32.xlu2 %v818_v56, %s1244_s14  ;;  %v813_v56 = vmul.f32 %v1571_v46, %v1523_v41  ;;  %v792_v46 = vmul.f32 %v1466_v30, %v1523_v41 }
 0x311   :  { %v758_v60 = vpop.permute.xlu0 %757 }
 0x312   :  { %v644_v59 = vpop.permute.xlu2 %643 }
 0x313   :  { %v649_v28 = vadd.f32 %v644_v59, %v619_v5 }
 0x31a   :  { %v748_v7 = vpop.permute.xlu2 %747 }
 0x31b   :  { %v753_v61 = vadd.f32 %v748_v7, %v723_v9 }
 0x31d   :  { %v763_v62 = vadd.f32 %v758_v60, %v753_v61 }
 0x31f   :  { %765 = vst.msk [vmem:[#allocation2 + $0x10] sm:$0xff] %vm78_vm0, %v763_v62 }
 0x321   :  { %v646_v14 = vpop.permute.xlu0 %645 }
 0x322   :  { %v423_v13 = vpop.permute.xlu2 %422  ;;  %v650_v35 = vadd.f32 %v646_v14, %v620_v22 }
 0x323   :  { %v428_v8 = vadd.f32 %v423_v13, %v418_v36  ;;  %v814_v13 = vmul.f32 %v1591_v27, %v1523_v41 }
 0x325   :  { %430 = vst.msk [vmem:[#allocation3 + $0x20] sm:$0xff] %vm78_vm0, %v428_v8 }
 0x326   :  { %v895_v51 = vld [vmem:[#allocation2 + $0x10] sm:$0xff] }
 0x329   :  { %v772_v19 = vpop.permute.xlu0 %771  ;;  %v654_v12 = vpop.permute.xlu1 %653 }
 0x32a   :  { %v659_v18 = vadd.f32 %v654_v12, %v649_v28  ;;  %v776_v23 = vadd.f32 %v772_v19, %v710_v21 }
 0x32c   :  { %661 = vst.msk [vmem:[#allocation2] sm:$0xff] %vm78_vm0, %v659_v18  ;;  %v442_v20 = vld [vmem:[#allocation3 + $0x20] sm:$0xff]  ;;  %v479_v18 = vpop.f32.mrf.mxu1 }
 0x32d   :  { %1108 = vmatmul.msk.f32.gmra.mxu1 %vm78_vm0, %v442_v20 }
 0x331   :  { %v782_v47 = vpop.permute.xlu0 %781  ;;  %v822_v24 = vpop.permute.xlu1 %821 }
 0x332   :  { %v786_v25 = vadd.f32 %v782_v47, %v776_v23  ;;  %v656_v26 = vpop.permute.xlu2 %655  ;;  %v827_v54 = vadd.f32 %v822_v24, %v791_v52  ;;  %v533_v23 = vadd.f32 %v1559_v39, %v479_v18  ;;  %v1245_v24 = vmov 0.0  }
 0x333   :  { %v660_v29 = vadd.f32 %v656_v26, %v650_v35  ;;  %v893_v32 = vld [vmem:[#allocation2] sm:$0xff] }
 0x334   :  { %788 = vst.msk [vmem:[#allocation3 + $0x18] sm:$0xff] %vm78_vm0, %v786_v25  ;;  %1142 = vmatmul.msk.f32.vlgmr.msrb.gmra.mxu3 %vm78_vm0, %v893_v32  ;;  %v482_v22 = vpop.f32.mrf.mxu1  ;;  %vm1011_vm2 = vcmp.lt.f32.partialorder %v533_v23, 0.0 }
 0x335   :  { %662 = vst.msk [vmem:[#allocation2 + $0x8] sm:$0xff] %vm78_vm0, %v660_v29  ;;  %v536_v27 = vadd.f32 %v1561_v40, %v482_v22 }
 0x337   :  { %vm1012_vm4 = vcmp.lt.f32.partialorder %v536_v27, 0.0 }
 0x339   :  { %v415_v33 = vpop.permute.xlu0 %414  ;;  %v852_v0 = vpop.permute.xlu1 %851 }
 0x33a   :  { %v862_v34 = vpop.permute.xlu2 %861  ;;  %v857_v37 = vadd.f32 %v852_v0, %v827_v54  ;;  %v419_v31 = vadd.f32 %v415_v33, %v353_v49 }
 0x33b   :  { %v902_v38 = vld [vmem:[#allocation3 + $0x18] sm:$0xff] }
 0x33c   :  { %v867_v45 = vadd.f32 %v862_v34, %v857_v37  ;;  %1139 = vmatmul.msk.f32.gmra.mxu0 %vm78_vm0, %v902_v38  ;;  %v894_v4 = vld [vmem:[#allocation2 + $0x8] sm:$0xff]  ;;  %v485_v26 = vpop.f32.mrf.mxu1 }
 0x33d   :  { %1143 = vmatmul.msk.f32.gmra.mxu3 %vm78_vm0, %v894_v4  ;;  %v539_v39 = vadd.f32 %v1563_v2, %v485_v26 }
 0x33e   :  { %869 = vst.msk [vmem:[#allocation2 + $0x20] sm:$0xff] %vm78_vm0, %v867_v45 }
 0x33f   :  { %vm1013_vm7 = vcmp.lt.f32.partialorder %v539_v39, 0.0 }
 0x341   :  { %v425_v50 = vpop.permute.xlu0 %424 }
 0x342   :  { %v429_v16 = vadd.f32 %v425_v50, %v419_v31  ;;  %v750_v48 = vpop.permute.xlu2 %749 }
 0x343   :  { %v754_v57 = vadd.f32 %v750_v48, %v724_v15 }
 0x344   :  { %431 = vst.msk [vmem:[#allocation3 + $0x28] sm:$0xff] %vm78_vm0, %v429_v16 }
 0x345   :  { %1144 = vmatmul.msk.f32.gmra.mxu3 %vm78_vm0, %v895_v51  ;;  %v897_v14 = vld [vmem:[#allocation2 + $0x20] sm:$0xff] }
 0x34a   :  { %v874_v53 = vpop.permute.xlu2 %873 }
 0x34b   :  { %v443_v17 = vld [vmem:[#allocation3 + $0x28] sm:$0xff]  ;;  %v879_v3 = vadd.f32 %v874_v53, %v813_v56 }
 0x34c   :  { %1109 = vmatmul.msk.f32.gmra.mxu1 %vm78_vm0, %v443_v17 }
 0x351   :  { %v760_v59 = vpop.permute.xlu1 %759 }
 0x352   :  { %v884_v6 = vpop.permute.xlu2 %883  ;;  %v764_v9 = vadd.f32 %v760_v59, %v754_v57 }
 0x353   :  { %v889_v60 = vadd.f32 %v884_v6, %v879_v3 }
 0x354   :  { %766 = vst.msk [vmem:[#allocation2 + $0x18] sm:$0xff] %vm78_vm0, %v764_v9  ;;  %v940_v10 = vpop.f32.mrf.mxu0 }
 0x355   :  { %891 = vst.msk [vmem:[#allocation3 + $0x20] sm:$0xff] %vm78_vm0, %v889_v60 }
 0x359   :  { %v824_v7 = vpop.permute.xlu1 %823 }
 0x35a   :  { %v828_v58 = vadd.f32 %v824_v7, %v792_v46  ;;  %v886_v28 = vpop.permute.xlu2 %885 }
 0x35b   :  { %v896_v61 = vld [vmem:[#allocation2 + $0x18] sm:$0xff] }
 0x35c   :  { %v903_v11 = vld [vmem:[#allocation3 + $0x20] sm:$0xff]  ;;  %1145 = vmatmul.msk.f32.gmra.mxu3 %vm78_vm0, %v896_v61  ;;  %v488_v45 = vpop.f32.mrf.mxu1 }
 0x35d   :  { %1140 = vmatmul.msk.f32.gmra.mxu0 %vm78_vm0, %v903_v11  ;;  %v542_v2 = vadd.f32 %v1565_v42, %v488_v45  ;;  %v1246_v11 = vmov 768.0  }
 0x35e   :  { %1167 = vrcp.f32 %v1246_v11 }
 0x35f   :  { %vm1014_vm11 = vcmp.lt.f32.partialorder %v542_v2, 0.0 }
 0x361   :  { %v854_v62 = vpop.permute.xlu1 %853 }
 0x362   :  { %v858_v63 = vadd.f32 %v854_v62, %v828_v58  ;;  %v864_v36 = vpop.permute.xlu0 %863 }
 0x364   :  { %v868_v1 = vadd.f32 %v864_v36, %v858_v63  ;;  %1146 = vmatmul.msk.f32.gmra.mxu3 %vm78_vm0, %v897_v14 }
 0x366   :  { %870 = vst.msk [vmem:[#allocation2 + $0x28] sm:$0xff] %vm78_vm0, %v868_v1 }
 0x369   :  { %v876_v8 = vpop.permute.xlu1 %875 }
 0x36a   :  { %v880_v5 = vadd.f32 %v876_v8, %v814_v13 }
 0x36c   :  { %v890_v19 = vadd.f32 %v886_v28, %v880_v5 }
 0x36d   :  { %v898_v12 = vld [vmem:[#allocation2 + $0x28] sm:$0xff] }
 0x36e   :  { %892 = vst.msk [vmem:[#allocation3 + $0x28] sm:$0xff] %vm78_vm0, %v890_v19  ;;  %1147 = vmatmul.msk.f32.gmra.mxu3 %vm78_vm0, %v898_v12 }
 0x374   :  { %v943_v41 = vpop.f32.mrf.mxu0 }
 0x375   :  { %v904_v30 = vld [vmem:[#allocation3 + $0x28] sm:$0xff] }
 0x376   :  { %1141 = vmatmul.msk.f32.gmra.mxu0 %vm78_vm0, %v904_v30 }
 0x37c   :  { %v946_v33 = vpop.f32.mrf.mxu0 }
 0x3aa   :  { %v491_v31 = vpop.f32.mrf.mxu1 }
 0x3ab   :  { %v545_v53 = vadd.f32 %v1567_v43, %v491_v31 }
 0x3ad   :  { %vm1015_vm14 = vcmp.lt.f32.partialorder %v545_v53, 0.0 }
 0x3b7   :  { %v993_v20 = vpop.f32.mrf.mxu3 }
 0x3b8   :  { %v994_v21 = vadd.f32 %v993_v20, %v940_v10 }
 0x3b9   :  { %v949_v4 = vpop.f32.mrf.mxu0 }
 0x3ba   :  { %vm1017_vm1 = vcmp.lt.f32.partialorder %v994_v21, 0.0 }
 0x3bb   :  { %vm1023_vm3 = vmxor %vm1011_vm2, %vm1017_vm1 }
 0x3bc   :  { %v1029_v25 = vsel %vm1023_vm3, 1.0, %v1245_v24 }
 0x3bd   :  { %v1035_v32 = vsel %vm78_vm0, %v1029_v25, 0.0 }
 0x3c0   :  { %v996_v35 = vpop.f32.mrf.mxu3 }
 0x3c1   :  { %v997_v47 = vadd.f32 %v996_v35, %v943_v41 }
 0x3c3   :  { %vm1018_vm5 = vcmp.lt.f32.partialorder %v997_v47, 0.0 }
 0x3c4   :  { %vm1024_vm6 = vmxor %vm1012_vm4, %vm1018_vm5 }
 0x3c5   :  { %v1030_v29 = vsel %vm1024_vm6, 1.0, %v1245_v24 }
 0x3c6   :  { %v1036_v52 = vsel %vm78_vm0, %v1030_v29, 0.0 }
 0x3c7   :  { %v1037_v54 = vadd.f32 %v1036_v52, %v1035_v32 }
 0x3c8   :  { %v999_v0 = vpop.f32.mrf.mxu3 }
 0x3c9   :  { %v1000_v40 = vadd.f32 %v999_v0, %v946_v33  ;;  %v494_v17 = vpop.f32.mrf.mxu1 }
 0x3ca   :  { %v548_v15 = vadd.f32 %v1569_v44, %v494_v17  ;;  %v1168_v44 = vpop.eup %1167 }
 0x3cb   :  { %vm1019_vm8 = vcmp.lt.f32.partialorder %v1000_v40, 0.0  ;;  %v1056_v46 = vmul.f32 768.0, %v1168_v44  ;;  %vm1060_vm4 = vweird.f32 %v1168_v44 }
 0x3cc   :  { %vm1025_vm9 = vmxor %vm1013_vm7, %vm1019_vm8  ;;  %vm1016_vm1 = vcmp.lt.f32.partialorder %v548_v15, 0.0 }
 0x3cd   :  { %v1031_v34 = vsel %vm1025_vm9, 1.0, %v1245_v24  ;;  %v1057_v58 = vsub.f32 1.0, %v1056_v46 }
 0x3ce   :  { %v1038_v37 = vsel %vm78_vm0, %v1031_v34, 0.0 }
 0x3cf   :  { %v1039_v38 = vadd.f32 %v1038_v37, %v1037_v54  ;;  %v1058_v14 = vmul.f32 %v1168_v44, %v1057_v58 }
 0x3d1   :  { %v1059_v8 = vadd.f32 %v1168_v44, %v1058_v14 }
 0x3d3   :  { %v1061_v19 = vsel %vm1060_vm4, %v1168_v44, %v1059_v8 }
 0x3da   :  { %v952_v16 = vpop.f32.mrf.mxu0 }
 0x3df   :  { %v1002_v49 = vpop.f32.mrf.mxu3 }
 0x3e0   :  { %v1003_v50 = vadd.f32 %v1002_v49, %v949_v4 }
 0x3e2   :  { %vm1020_vm10 = vcmp.lt.f32.partialorder %v1003_v50, 0.0 }
 0x3e3   :  { %vm1026_vm13 = vmxor %vm1014_vm11, %vm1020_vm10 }
 0x3e4   :  { %v1032_v55 = vsel %vm1026_vm13, 1.0, %v1245_v24 }
 0x3e5   :  { %v1040_v57 = vsel %vm78_vm0, %v1032_v55, 0.0 }
 0x3e6   :  { %v1041_v43 = vadd.f32 %v1040_v57, %v1039_v38 }
 0x3e7   :  { %v1005_v48 = vpop.f32.mrf.mxu3 }
 0x3e8   :  { %v1006_v51 = vadd.f32 %v1005_v48, %v952_v16 }
 0x3ea   :  { %vm1021_vm12 = vcmp.lt.f32.partialorder %v1006_v51, 0.0 }
 0x3eb   :  { %vm1027_vm15 = vmxor %vm1015_vm14, %vm1021_vm12 }
 0x3ec   :  { %v1033_v56 = vsel %vm1027_vm15, 1.0, %v1245_v24 }
 0x3ed   :  { %v1042_v42 = vsel %vm78_vm0, %v1033_v56, 0.0 }
 0x3ee   :  { %v1043_v60 = vadd.f32 %v1042_v42, %v1041_v43 }
 0x3f1   :  { %v1008_v3 = vpop.f32.mrf.mxu3 }
 0x3f3   :  { %v955_v59 = vpop.f32.mrf.mxu0 }
 0x3f4   :  { %v1009_v6 = vadd.f32 %v1008_v3, %v955_v59 }
 0x3f6   :  { %vm1022_vm2 = vcmp.lt.f32.partialorder %v1009_v6, 0.0 }
 0x3f7   :  { %vm1028_vm3 = vmxor %vm1016_vm1, %vm1022_vm2 }
 0x3f8   :  { %v1034_v9 = vsel %vm1028_vm3, 1.0, %v1245_v24 }
 0x3f9   :  { %v1044_v7 = vsel %vm78_vm0, %v1034_v9, 0.0 }
 0x3fa   :  { %v1045_v61 = vadd.f32 %v1044_v7, %v1043_v60 }
 0x3fc   :  { %1046 = vadd.xlane.f32.xlu0 %v1045_v61 }
 0x46f   :  { %v1047_v62 = vpop.xlane.xlu0 %1046 }
 0x470   :  { %v1048_v63 = vrot.slane %v1047_v62, 4 }
 0x472   :  { %v1049_v36 = vadd.f32 %v1048_v63, %v1047_v62 }
 0x474   :  { %v1050_v1 = vrot.slane %v1049_v36, 2 }
 0x476   :  { %v1051_v13 = vadd.f32 %v1050_v1, %v1049_v36 }
 0x478   :  { %v1052_v5 = vrot.slane %v1051_v13, 1 }
 0x47a   :  { %v1053_v28 = vadd.f32 %v1052_v5, %v1051_v13 }
 0x47c   :  { %1152 = vpush %v1053_v28 }
 0x47d   :  { %1154 = vpush %v1061_v19 }
 0x4ad   :  { %s1153_s26 = spop %1152 }
 0x4ae   :  { %s1155_s27 = spop %1154 }
 0x4af   :  { %s1063_s28 = smul.f32 %s1155_s27, %s1153_s26 }
 0x4b1   :  { %1065 = sst [smem:[#allocation11]] %s1063_s28 }
 0x4b2   :  { %1074 = dma.smem_to_hbm %s1247_s29, 16, %s1072_s25, [#allocation7]  }
 0x4b3   :  { %1235 = dma.done.wait [#allocation7], 16  }
 0x4b4   :  { %1236 = vsyncadd [#allocation7], 4294967280 }
 0x4b5   :  { %1079 = sfence }
 0x4b6   :  { %1080 = vsyncpa [#allocation5], 1 }
 0x4b7   :  { %1081 = vsyncpa [#allocation6], 1 }
 0x4b8   :  { %1082 = vsyncpa [#allocation7], 1 }
 0x4b9   :  { %1083 = vsyncpa [#allocation8], 1 }

</bundles_post_ra>
